<compile_context>
chip_gen: v7x
topology: tpu7x:2x2x1
jax: 0.10.0
libtpu: 0.0.40
codegen_flags: <defaults>
</compile_context>

<pallas_src>
import functools
import math

import jax
import jax.numpy as jnp
from jax.experimental import pallas as pl
from jax.experimental.pallas import tpu as pltpu

LN_EPS = 1e-12

# MXU operand dtype.  jnp.bfloat16 gives ~2x MXU throughput + half the weight
# DMA bytes on v6e/v7x; keep float32 (default) for reference-faithful numerics
# and for v5e (whose VPU/EUP have no bf16 path).
MATMUL_INPUT_DTYPE = jnp.float32


# ----------------------------- config ---------------------------------------
class Config:
    vocab_size = 50
    hidden_size = 32
    num_hidden_layers = 2
    num_attention_heads = 4
    intermediate_size = 64
    max_position_embeddings = 16
    type_vocab_size = 2
    num_labels = 3


# ----------------------------- kernel helpers --------------------------------
def _layernorm(x, gamma, beta):
    mu = jnp.mean(x, axis=-1, keepdims=True)
    var = jnp.mean((x - mu) ** 2, axis=-1, keepdims=True)
    return (x - mu) * jax.lax.rsqrt(var + LN_EPS) * gamma + beta


def _gelu(x):
    return jax.nn.gelu(x, approximate=True)


def _mm(a, b):
    return jnp.dot(a.astype(MATMUL_INPUT_DTYPE), b.astype(MATMUL_INPUT_DTYPE),
                   preferred_element_type=jnp.float32)


# ----------------------------- fused forward kernel --------------------------
def _fused_forward_kernel(nh, hd, mix,
                          # inputs
                          l_ref, emb_ref, emb2_ref, mask_ref,
                          embg_ref, embb_ref,
                          wqkv_ref, bqkv_ref, wo_ref, bo_ref,
                          ln1g_ref, ln1b_ref, w1_ref, b1_ref,
                          w2_ref, b2_ref, ln2g_ref, ln2b_ref,
                          wp_ref, bp_ref, wc_ref, bc_ref,
                          # outputs
                          emb_out_ref, layer_in_ref, final_ref,
                          pooled_ref, logits_ref,
                          # scratch
                          hid_ref):
    """Grid = (batch, layer); batch is 'parallel', layer is 'arbitrary'.

    The hidden state for the current batch element persists in hid_ref
    (VMEM scratch) across the layer axis; layer-i weights are streamed in by
    BlockSpec and double-buffered behind layer i-1 compute.
    """
    i = pl.program_id(1)                 # layer index (inner grid axis)
    n_layers = pl.num_programs(1)
    S, H = hid_ref.shape
    scale = 1.0 / math.sqrt(hd)

    # ---- layer 0: embedding-sum LayerNorm (+ optional mixup) ----------------
    @pl.when(i == 0)
    def _embed():
        emb1 = _layernorm(emb_ref[...], embg_ref[...], embb_ref[...])
        emb_out_ref[...] = emb1                     # embedding_output (pre-mix)
        if mix:                                     # static python flag
            emb2 = _layernorm(emb2_ref[...], embg_ref[...], embb_ref[...])
            lam = l_ref[0]
            hid_ref[...] = lam * emb1 + (1.0 - lam) * emb2
        else:
            hid_ref[...] = emb1

    x = hid_ref[...]                                # [S, H] layer input
    layer_in_ref[...] = x                           # all_hidden_states[i]

    # ---- self-attention: fused QKV projection, per-head softmax -------------
    qkv = _mm(x, wqkv_ref[...]) + bqkv_ref[...]     # [S, 3H]
    mask = mask_ref[...]                            # [1, S] additive mask

    ctx_heads = []
    for h in range(nh):                             # static unroll, nh small
        qh = qkv[:, h * hd:(h + 1) * hd]
        kh = qkv[:, H + h * hd:H + (h + 1) * hd]
        vh = qkv[:, 2 * H + h * hd:2 * H + (h + 1) * hd]
        s = jax.lax.dot_general(
            qh.astype(MATMUL_INPUT_DTYPE), kh.astype(MATMUL_INPUT_DTYPE),
            (((1,), (1,)), ((), ())),
            preferred_element_type=jnp.float32) * scale + mask       # [S, S]
        s = s - jnp.max(s, axis=-1, keepdims=True)
        p = jnp.exp(s)
        p = p * pl.reciprocal(jnp.sum(p, axis=-1, keepdims=True), approx=True)
        ctx_heads.append(_mm(p, vh))                # [S, hd]
    ctx = jnp.concatenate(ctx_heads, axis=-1)       # [S, H]
    attn = _mm(ctx, wo_ref[...]) + bo_ref[...]

    # ---- residual + LN, GELU FFN, residual + LN ------------------------------
    h1 = _layernorm(attn + x, ln1g_ref[...], ln1b_ref[...])
    ff = _gelu(_mm(h1, w1_ref[...]) + b1_ref[...])
    ff = _mm(ff, w2_ref[...]) + b2_ref[...]
    h2 = _layernorm(ff + h1, ln2g_ref[...], ln2b_ref[...])
    hid_ref[...] = h2

    # ---- last layer: emit sequence output, pooler, classifier ----------------
    @pl.when(i == n_layers - 1)
    def _finalize():
        final_ref[...] = h2
        cls = h2[0:1, :]                                        # [CLS] token
        pooled = jnp.tanh(_mm(cls, wp_ref[...]) + bp_ref[...])  # [1, H]
        pooled_ref[...] = pooled
        # dropout(pooled) is identity in eval mode
        logits_ref[...] = _mm(pooled, wc_ref[...]) + bc_ref[...]


# ----------------------------- pallas_call wrapper ---------------------------
def fused_mixtext_forward(params, cfg, emb_sum, ext_mask,
                          emb_sum2=None, l=None, mix=False):
    B, S, H = emb_sum.shape
    L = cfg.num_hidden_layers
    I = cfg.intermediate_size
    C = cfg.num_labels
    nh = cfg.num_attention_heads
    hd = H // nh
    st = params["stacked"]

    if mix:
        l_val = jnp.full((1,), l, jnp.float32)
    else:
        emb_sum2 = emb_sum                     # ignored inside the kernel
        l_val = jnp.ones((1,), jnp.float32)

    kernel = functools.partial(_fused_forward_kernel, nh, hd, mix)

    smem_spec = pl.BlockSpec(memory_space=pltpu.MemorySpace.SMEM)
    batch3 = pl.BlockSpec((None, S, H), lambda b, i: (b, 0, 0))
    mask_spec = pl.BlockSpec((None, 1, S), lambda b, i: (b, 0, 0))

    def full2(r, c):
        return pl.BlockSpec((r, c), lambda b, i: (0, 0))

    def per_layer(r, c):
        return pl.BlockSpec((None, r, c), lambda b, i: (i, 0, 0))

    in_specs = [
        smem_spec,                                   # l  (SMEM scalar)
        batch3, batch3,                              # emb_sum, emb_sum2
        mask_spec,                                   # extended attention mask
        full2(1, H), full2(1, H),                    # embedding LN gamma/beta
        per_layer(H, 3 * H), per_layer(1, 3 * H),    # fused QKV weight / bias
        per_layer(H, H), per_layer(1, H),            # attn output proj
        per_layer(1, H), per_layer(1, H),            # LN1 gamma/beta
        per_layer(H, I), per_layer(1, I),            # FFN in
        per_layer(I, H), per_layer(1, H),            # FFN out
        per_layer(1, H), per_layer(1, H),            # LN2 gamma/beta
        full2(H, H), full2(1, H),                    # pooler
        full2(H, C), full2(1, C),                    # classifier
    ]

    out_shape = (
        jax.ShapeDtypeStruct((B, S, H), jnp.float32),      # embedding_output
        jax.ShapeDtypeStruct((L * B, S, H), jnp.float32),  # per-layer inputs
        jax.ShapeDtypeStruct((B, S, H), jnp.float32),      # sequence_output
        jax.ShapeDtypeStruct((B, 1, H), jnp.float32),      # pooled_output
        jax.ShapeDtypeStruct((B, 1, C), jnp.float32),      # logits
    )
    out_specs = (
        pl.BlockSpec((None, S, H), lambda b, i: (b, 0, 0)),
        pl.BlockSpec((None, S, H), lambda b, i: (i * B + b, 0, 0)),
        pl.BlockSpec((None, S, H), lambda b, i: (b, 0, 0)),
        pl.BlockSpec((None, 1, H), lambda b, i: (b, 0, 0)),
        pl.BlockSpec((None, 1, C), lambda b, i: (b, 0, 0)),
    )

    emb_out, layer_in_flat, final_h, pooled, logits = pl.pallas_call(
        kernel,
        grid=(B, L),
        in_specs=in_specs,
        out_specs=out_specs,
        out_shape=out_shape,
        scratch_shapes=[pltpu.VMEM((S, H), jnp.float32)],
        compiler_params=pltpu.CompilerParams(
            dimension_semantics=("parallel", "arbitrary")),
    )(l_val, emb_sum, emb_sum2, ext_mask,
      params["emb_ln_g"], params["emb_ln_b"],
      st["wqkv"], st["bqkv"], st["wo"], st["bo"],
      st["ln1_g"], st["ln1_b"], st["w1"], st["b1"],
      st["w2"], st["b2"], st["ln2_g"], st["ln2_b"],
      params["pooler_w"], params["pooler_b"],
      params["cls_w"], params["cls_b"])

    layer_in = layer_in_flat.reshape(L, B, S, H)
    return emb_out, layer_in, final_h, pooled[:, 0, :], logits[:, 0, :]


# ----------------------------- parameters ------------------------------------
def init_params(key, cfg):
    H, I, L, C = (cfg.hidden_size, cfg.intermediate_size,
                  cfg.num_hidden_layers, cfg.num_labels)

    def normal(k, shape):
        return 0.02 * jax.random.normal(k, shape, dtype=jnp.float32)

    keys = iter(jax.random.split(key, 5 + 6 * L))
    params = {
        "word_emb": normal(next(keys), (cfg.vocab_size, H)),
        "pos_emb": normal(next(keys), (cfg.max_position_embeddings, H)),
        "type_emb": normal(next(keys), (cfg.type_vocab_size, H)),
        "emb_ln_g": jnp.ones((1, H), jnp.float32),
        "emb_ln_b": jnp.zeros((1, H), jnp.float32),
        "pooler_w": normal(next(keys), (H, H)),
        "pooler_b": jnp.zeros((1, H), jnp.float32),
        "cls_w": normal(next(keys), (H, C)),
        "cls_b": jnp.zeros((1, C), jnp.float32),
    }

    wqkv, wo, w1, w2 = [], [], [], []
    for _ in range(L):
        wq, wk, wv = (normal(next(keys), (H, H)) for _ in range(1)), None, None
        wq = normal(next(keys), (H, H))
        wk = normal(next(keys), (H, H))
        wv = normal(next(keys), (H, H))
        wqkv.append(jnp.concatenate([wq, wk, wv], axis=1))    # [H, 3H]
        wo.append(normal(next(keys), (H, H)))
        w1.append(normal(next(keys), (H, I)))
        w2.append(normal(next(keys), (I, H)))

    params["stacked"] = {
        "wqkv": jnp.stack(wqkv),                               # [L, H, 3H]
        "bqkv": jnp.zeros((L, 1, 3 * H), jnp.float32),
        "wo": jnp.stack(wo), "bo": jnp.zeros((L, 1, H), jnp.float32),
        "ln1_g": jnp.ones((L, 1, H), jnp.float32),
        "ln1_b": jnp.zeros((L, 1, H), jnp.float32),
        "w1": jnp.stack(w1), "b1": jnp.zeros((L, 1, I), jnp.float32),
        "w2": jnp.stack(w2), "b2": jnp.zeros((L, 1, H), jnp.float32),
        "ln2_g": jnp.ones((L, 1, H), jnp.float32),
        "ln2_b": jnp.zeros((L, 1, H), jnp.float32),
    }
    return params


# ----------------------------- model forward ---------------------------------
def _embedding_sum(params, input_ids, token_type_ids):
    # Embedding-table gathers stay in XLA; sum + LayerNorm happen in the kernel.
    B, S = input_ids.shape
    we = jnp.take(params["word_emb"], input_ids, axis=0)            # [B,S,H]
    pe = jnp.broadcast_to(params["pos_emb"][:S][None], we.shape)    # [B,S,H]
    te = jnp.take(params["type_emb"], token_type_ids, axis=0)       # [B,S,H]
    return we + pe + te


def _extend_mask(attention_mask):
    return (1.0 - attention_mask.astype(jnp.float32))[:, None, :] * -10000.0


def mixtext_forward(params, cfg, input_ids, attention_mask, token_type_ids,
                    input_ids2=None, attention_mask2=None, token_type_ids2=None,
                    l=None, mix_layer=1000):
    ext_mask = _extend_mask(attention_mask)
    emb_sum = _embedding_sum(params, input_ids, token_type_ids)

    mix = (input_ids2 is not None) and (mix_layer == -1)
    emb_sum2 = (_embedding_sum(params, input_ids2, token_type_ids2)
                if input_ids2 is not None else None)
    # NOTE: when input_ids2 is given with mix_layer >= 0 the original PyTorch
    # code also runs hidden_states2 through layers i <= mix_layer, but that
    # result never reaches any output (and the `elif i == mix_layer` mixing
    # branch is shadowed by `i <= mix_layer`), so the dead computation is
    # skipped here; observable outputs are identical.

    emb_out, layer_in, seq_out, pooled, logits = fused_mixtext_forward(
        params, cfg, emb_sum, ext_mask, emb_sum2, l, mix)

    all_hidden = tuple(layer_in[i] for i in range(cfg.num_hidden_layers)) + (seq_out,)
    outputs = (seq_out, pooled, emb_out, all_hidden)
    return logits, outputs


# ----------------------------- main ------------------------------------------
if __name__ == "__main__":
    cfg = Config()
    B, S = 2, 8

    key = jax.random.PRNGKey(0)
    kp, k1, k2 = jax.random.split(key, 3)
    params = init_params(kp, cfg)

    input_ids = jax.random.randint(k1, (B, S), 0, cfg.vocab_size, dtype=jnp.int32)
    attention_mask = jnp.array([[1] * S, [1, 1, 1, 1, 1, 1, 0, 0]], dtype=jnp.int32)
    token_type_ids = jnp.zeros((B, S), dtype=jnp.int32)

    # path 1: plain forward (no mixing)
    logits, outputs = mixtext_forward(params, cfg, input_ids, attention_mask,
                                      token_type_ids)
    jax.block_until_ready(logits)
    jax.block_until_ready(outputs[0])

    # path 2: mixup path (mix_layer = -1 mixes the embeddings)
    input_ids2 = jax.random.randint(k2, (B, S), 0, cfg.vocab_size, dtype=jnp.int32)
    attention_mask2 = jnp.ones((B, S), dtype=jnp.int32)
    token_type_ids2 = jnp.zeros((B, S), dtype=jnp.int32)
    logits_mix, outputs_mix = mixtext_forward(
        params, cfg, input_ids, attention_mask, token_type_ids,
        input_ids2, attention_mask2, token_type_ids2, l=0.7, mix_layer=-1)
    jax.block_until_ready(logits_mix)
    jax.block_until_ready(outputs_mix[0])

    assert logits.shape == (B, cfg.num_labels)
    assert logits_mix.shape == (B, cfg.num_labels)
    assert outputs[0].shape == (B, S, cfg.hidden_size)
    assert outputs[1].shape == (B, cfg.hidden_size)
    assert outputs[2].shape == (B, S, cfg.hidden_size)
    assert len(outputs[3]) == cfg.num_hidden_layers + 1
    assert all(h.shape == (B, S, cfg.hidden_size) for h in outputs[3])
    print("KERNEL_OK")
</pallas_src>

<mosaic_0001>
module attributes {stable_mosaic.version = 11 : i64} {
  func.func @_fused_forward_kernel(%arg0: i32, %arg1: i32, %arg2: memref<1xf32, #tpu.memory_space<smem>>, %arg3: memref<1x8x32xf32, #tpu.memory_space<vmem>>, %arg4: memref<1x8x32xf32, #tpu.memory_space<vmem>>, %arg5: memref<1x1x8xf32, #tpu.memory_space<vmem>>, %arg6: memref<1x32xf32, #tpu.memory_space<vmem>>, %arg7: memref<1x32xf32, #tpu.memory_space<vmem>>, %arg8: memref<1x32x96xf32, #tpu.memory_space<vmem>>, %arg9: memref<1x1x96xf32, #tpu.memory_space<vmem>>, %arg10: memref<1x32x32xf32, #tpu.memory_space<vmem>>, %arg11: memref<1x1x32xf32, #tpu.memory_space<vmem>>, %arg12: memref<1x1x32xf32, #tpu.memory_space<vmem>>, %arg13: memref<1x1x32xf32, #tpu.memory_space<vmem>>, %arg14: memref<1x32x64xf32, #tpu.memory_space<vmem>>, %arg15: memref<1x1x64xf32, #tpu.memory_space<vmem>>, %arg16: memref<1x64x32xf32, #tpu.memory_space<vmem>>, %arg17: memref<1x1x32xf32, #tpu.memory_space<vmem>>, %arg18: memref<1x1x32xf32, #tpu.memory_space<vmem>>, %arg19: memref<1x1x32xf32, #tpu.memory_space<vmem>>, %arg20: memref<32x32xf32, #tpu.memory_space<vmem>>, %arg21: memref<1x32xf32, #tpu.memory_space<vmem>>, %arg22: memref<32x3xf32, #tpu.memory_space<vmem>>, %arg23: memref<1x3xf32, #tpu.memory_space<vmem>>, %arg24: memref<1x8x32xf32, #tpu.memory_space<vmem>>, %arg25: memref<1x8x32xf32, #tpu.memory_space<vmem>>, %arg26: memref<1x8x32xf32, #tpu.memory_space<vmem>>, %arg27: memref<1x1x32xf32, #tpu.memory_space<vmem>>, %arg28: memref<1x1x3xf32, #tpu.memory_space<vmem>>, %arg29: memref<8x32xf32, #tpu.memory_space<vmem>>) attributes {dimension_semantics = [#tpu.dimension_semantics<parallel>, #tpu.dimension_semantics<arbitrary>], iteration_bounds = array<i64: 2, 2>, scalar_prefetch = 0 : i64, scratch_operands = 1 : i64, tpu.core_type = #tpu.core_type<tc>, window_params = [{transform_indices = @transform_0, window_bounds = array<i64: 1>}, {transform_indices = @transform_1, window_bounds = array<i64: 1, 8, 32>}, {transform_indices = @transform_2, window_bounds = array<i64: 1, 8, 32>}, {transform_indices = @transform_3, window_bounds = array<i64: 1, 1, 8>}, {pipeline_mode = #tpu.pipeline_mode<synchronous>, transform_indices = @transform_4, window_bounds = array<i64: 1, 32>}, {pipeline_mode = #tpu.pipeline_mode<synchronous>, transform_indices = @transform_5, window_bounds = array<i64: 1, 32>}, {transform_indices = @transform_6, window_bounds = array<i64: 1, 32, 96>}, {transform_indices = @transform_7, window_bounds = array<i64: 1, 1, 96>}, {transform_indices = @transform_8, window_bounds = array<i64: 1, 32, 32>}, {transform_indices = @transform_9, window_bounds = array<i64: 1, 1, 32>}, {transform_indices = @transform_10, window_bounds = array<i64: 1, 1, 32>}, {transform_indices = @transform_11, window_bounds = array<i64: 1, 1, 32>}, {transform_indices = @transform_12, window_bounds = array<i64: 1, 32, 64>}, {transform_indices = @transform_13, window_bounds = array<i64: 1, 1, 64>}, {transform_indices = @transform_14, window_bounds = array<i64: 1, 64, 32>}, {transform_indices = @transform_15, window_bounds = array<i64: 1, 1, 32>}, {transform_indices = @transform_16, window_bounds = array<i64: 1, 1, 32>}, {transform_indices = @transform_17, window_bounds = array<i64: 1, 1, 32>}, {pipeline_mode = #tpu.pipeline_mode<synchronous>, transform_indices = @transform_18, window_bounds = array<i64: 32, 32>}, {pipeline_mode = #tpu.pipeline_mode<synchronous>, transform_indices = @transform_19, window_bounds = array<i64: 1, 32>}, {pipeline_mode = #tpu.pipeline_mode<synchronous>, transform_indices = @transform_20, window_bounds = array<i64: 32, 3>}, {pipeline_mode = #tpu.pipeline_mode<synchronous>, transform_indices = @transform_21, window_bounds = array<i64: 1, 3>}, {transform_indices = @transform_22, window_bounds = array<i64: 1, 8, 32>}, {transform_indices = @transform_23, window_bounds = array<i64: 1, 8, 32>}, {transform_indices = @transform_24, window_bounds = array<i64: 1, 8, 32>}, {transform_indices = @transform_25, window_bounds = array<i64: 1, 1, 32>}, {transform_indices = @transform_26, window_bounds = array<i64: 1, 1, 3>}]} {
    %c0_i32 = arith.constant 0 : i32
    %0 = arith.cmpi eq, %arg1, %c0_i32 : i32
    %1 = arith.extui %0 : i1 to i32
    %c0_i32_0 = arith.constant 0 : i32
    %2 = arith.cmpi ne, %1, %c0_i32_0 : i32
    scf.if %2 {
      %c0_84 = arith.constant 0 : index
      %c0_85 = arith.constant 0 : index
      %c0_86 = arith.constant 0 : index
      %185 = vector.load %arg3[%c0_84, %c0_85, %c0_86] : memref<1x8x32xf32, #tpu.memory_space<vmem>>, vector<1x8x32xf32>
      %186 = vector.shape_cast %185 : vector<1x8x32xf32> to vector<8x32xf32>
      %c0_87 = arith.constant 0 : index
      %c0_88 = arith.constant 0 : index
      %187 = vector.load %arg6[%c0_87, %c0_88] : memref<1x32xf32, #tpu.memory_space<vmem>>, vector<1x32xf32>
      %c0_89 = arith.constant 0 : index
      %c0_90 = arith.constant 0 : index
      %188 = vector.load %arg7[%c0_89, %c0_90] : memref<1x32xf32, #tpu.memory_space<vmem>>, vector<1x32xf32>
      %cst_91 = arith.constant dense<0.000000e+00> : vector<8xf32>
      %189 = vector.multi_reduction <add>, %186, %cst_91 [1] : vector<8x32xf32> to vector<8xf32>
      %190 = vector.shape_cast %189 : vector<8xf32> to vector<8x1xf32>
      %cst_92 = arith.constant 3.200000e+01 : f32
      %191 = vector.broadcast %cst_92 : f32 to vector<8x1xf32>
      %192 = arith.divf %190, %191 : vector<8x1xf32>
      %193 = vector.broadcast %192 : vector<8x1xf32> to vector<8x32xf32>
      %194 = arith.subf %186, %193 : vector<8x32xf32>
      %195 = arith.mulf %194, %194 : vector<8x32xf32>
      %cst_93 = arith.constant dense<0.000000e+00> : vector<8xf32>
      %196 = vector.multi_reduction <add>, %195, %cst_93 [1] : vector<8x32xf32> to vector<8xf32>
      %197 = vector.shape_cast %196 : vector<8xf32> to vector<8x1xf32>
      %cst_94 = arith.constant 3.200000e+01 : f32
      %198 = vector.broadcast %cst_94 : f32 to vector<8x1xf32>
      %199 = arith.divf %197, %198 : vector<8x1xf32>
      %200 = vector.broadcast %192 : vector<8x1xf32> to vector<8x32xf32>
      %201 = arith.subf %186, %200 : vector<8x32xf32>
      %cst_95 = arith.constant 9.99999996E-13 : f32
      %202 = vector.broadcast %cst_95 : f32 to vector<8x1xf32>
      %203 = arith.addf %199, %202 : vector<8x1xf32>
      %204 = math.rsqrt %203 : vector<8x1xf32>
      %205 = vector.broadcast %204 : vector<8x1xf32> to vector<8x32xf32>
      %206 = arith.mulf %201, %205 : vector<8x32xf32>
      %207 = vector.broadcast %187 : vector<1x32xf32> to vector<8x32xf32>
      %208 = arith.mulf %206, %207 : vector<8x32xf32>
      %209 = vector.broadcast %188 : vector<1x32xf32> to vector<8x32xf32>
      %210 = arith.addf %208, %209 : vector<8x32xf32>
      %c0_96 = arith.constant 0 : index
      %c0_97 = arith.constant 0 : index
      %c0_98 = arith.constant 0 : index
      %211 = vector.load %arg24[%c0_96, %c0_97, %c0_98] : memref<1x8x32xf32, #tpu.memory_space<vmem>>, vector<1x8x32xf32>
      %212 = vector.shape_cast %211 : vector<1x8x32xf32> to vector<8x32xf32>
      %213 = vector.shape_cast %210 : vector<8x32xf32> to vector<1x8x32xf32>
      tpu.vector_store %arg24[%c0_96, %c0_97, %c0_98], %213 {strides = array<i32>} : memref<1x8x32xf32, #tpu.memory_space<vmem>>, vector<1x8x32xf32>,
      %c0_99 = arith.constant 0 : index
      %c0_100 = arith.constant 0 : index
      %214 = vector.load %arg29[%c0_99, %c0_100] : memref<8x32xf32, #tpu.memory_space<vmem>>, vector<8x32xf32>
      tpu.vector_store %arg29[%c0_99, %c0_100], %210 {strides = array<i32>} : memref<8x32xf32, #tpu.memory_space<vmem>>, vector<8x32xf32>,
    } else {
    }
    %c0 = arith.constant 0 : index
    %c0_1 = arith.constant 0 : index
    %3 = vector.load %arg29[%c0, %c0_1] : memref<8x32xf32, #tpu.memory_space<vmem>>, vector<8x32xf32>
    %c0_2 = arith.constant 0 : index
    %c0_3 = arith.constant 0 : index
    %c0_4 = arith.constant 0 : index
    %4 = vector.load %arg25[%c0_2, %c0_3, %c0_4] : memref<1x8x32xf32, #tpu.memory_space<vmem>>, vector<1x8x32xf32>
    %5 = vector.shape_cast %4 : vector<1x8x32xf32> to vector<8x32xf32>
    %6 = vector.shape_cast %3 : vector<8x32xf32> to vector<1x8x32xf32>
    tpu.vector_store %arg25[%c0_2, %c0_3, %c0_4], %6 {strides = array<i32>} : memref<1x8x32xf32, #tpu.memory_space<vmem>>, vector<1x8x32xf32>,
    %c0_5 = arith.constant 0 : index
    %c0_6 = arith.constant 0 : index
    %c0_7 = arith.constant 0 : index
    %7 = vector.load %arg8[%c0_5, %c0_6, %c0_7] : memref<1x32x96xf32, #tpu.memory_space<vmem>>, vector<1x32x96xf32>
    %8 = vector.shape_cast %7 : vector<1x32x96xf32> to vector<32x96xf32>
    %cst = arith.constant dense<0.000000e+00> : vector<8x96xf32>
    %9 = tpu.matmul %3, %8, %cst {dimension_numbers = #tpu.dot_dimension_numbers<[1], [0], [0], [1], [0, 0, 1, 1], [], []>} : vector<8x32xf32>, vector<32x96xf32>, vector<8x96xf32> -> vector<8x96xf32>
    %c0_8 = arith.constant 0 : index
    %c0_9 = arith.constant 0 : index
    %c0_10 = arith.constant 0 : index
    %10 = vector.load %arg9[%c0_8, %c0_9, %c0_10] : memref<1x1x96xf32, #tpu.memory_space<vmem>>, vector<1x1x96xf32>
    %11 = vector.shape_cast %10 : vector<1x1x96xf32> to vector<1x96xf32>
    %12 = vector.broadcast %11 : vector<1x96xf32> to vector<8x96xf32>
    %13 = arith.addf %9, %12 : vector<8x96xf32>
    %c0_11 = arith.constant 0 : index
    %c0_12 = arith.constant 0 : index
    %c0_13 = arith.constant 0 : index
    %14 = vector.load %arg5[%c0_11, %c0_12, %c0_13] : memref<1x1x8xf32, #tpu.memory_space<vmem>>, vector<1x1x8xf32>
    %15 = vector.shape_cast %14 : vector<1x1x8xf32> to vector<1x8xf32>
    %16 = vector.extract_strided_slice %13 {offsets = [0, 0], sizes = [8, 8], strides = [1, 1]} : vector<8x96xf32> to vector<8x8xf32>
    %17 = vector.extract_strided_slice %13 {offsets = [0, 32], sizes = [8, 8], strides = [1, 1]} : vector<8x96xf32> to vector<8x8xf32>
    %18 = vector.extract_strided_slice %13 {offsets = [0, 64], sizes = [8, 8], strides = [1, 1]} : vector<8x96xf32> to vector<8x8xf32>
    %cst_14 = arith.constant dense<0.000000e+00> : vector<8x8xf32>
    %19 = tpu.matmul %16, %17, %cst_14 {dimension_numbers = #tpu.dot_dimension_numbers<[1], [1], [0], [0], [0, 0, 1, 0], [], []>} : vector<8x8xf32>, vector<8x8xf32>, vector<8x8xf32> -> vector<8x8xf32>
    %cst_15 = arith.constant 0.353553385 : f32
    %20 = vector.broadcast %cst_15 : f32 to vector<8x8xf32>
    %21 = arith.mulf %19, %20 : vector<8x8xf32>
    %22 = vector.broadcast %15 : vector<1x8xf32> to vector<8x8xf32>
    %23 = arith.addf %21, %22 : vector<8x8xf32>
    %cst_16 = arith.constant dense<0xFF800000> : vector<8xf32>
    %24 = vector.multi_reduction <maximumf>, %23, %cst_16 [1] : vector<8x8xf32> to vector<8xf32>
    %25 = vector.shape_cast %24 : vector<8xf32> to vector<8x1xf32>
    %26 = vector.broadcast %25 : vector<8x1xf32> to vector<8x8xf32>
    %27 = arith.subf %23, %26 : vector<8x8xf32>
    %28 = math.exp %27 : vector<8x8xf32>
    %cst_17 = arith.constant dense<0.000000e+00> : vector<8xf32>
    %29 = vector.multi_reduction <add>, %28, %cst_17 [1] : vector<8x8xf32> to vector<8xf32>
    %30 = vector.shape_cast %29 : vector<8xf32> to vector<8x1xf32>
    %31 = tpu.reciprocal %30 {approx = true} : vector<8x1xf32> -> vector<8x1xf32>
    %32 = vector.broadcast %31 : vector<8x1xf32> to vector<8x8xf32>
    %33 = arith.mulf %28, %32 : vector<8x8xf32>
    %cst_18 = arith.constant dense<0.000000e+00> : vector<8x8xf32>
    %34 = tpu.matmul %33, %18, %cst_18 {dimension_numbers = #tpu.dot_dimension_numbers<[1], [0], [0], [1], [0, 0, 1, 1], [], []>} : vector<8x8xf32>, vector<8x8xf32>, vector<8x8xf32> -> vector<8x8xf32>
    %35 = vector.extract_strided_slice %13 {offsets = [0, 8], sizes = [8, 8], strides = [1, 1]} : vector<8x96xf32> to vector<8x8xf32>
    %36 = vector.extract_strided_slice %13 {offsets = [0, 40], sizes = [8, 8], strides = [1, 1]} : vector<8x96xf32> to vector<8x8xf32>
    %37 = vector.extract_strided_slice %13 {offsets = [0, 72], sizes = [8, 8], strides = [1, 1]} : vector<8x96xf32> to vector<8x8xf32>
    %cst_19 = arith.constant dense<0.000000e+00> : vector<8x8xf32>
    %38 = tpu.matmul %35, %36, %cst_19 {dimension_numbers = #tpu.dot_dimension_numbers<[1], [1], [0], [0], [0, 0, 1, 0], [], []>} : vector<8x8xf32>, vector<8x8xf32>, vector<8x8xf32> -> vector<8x8xf32>
    %cst_20 = arith.constant 0.353553385 : f32
    %39 = vector.broadcast %cst_20 : f32 to vector<8x8xf32>
    %40 = arith.mulf %38, %39 : vector<8x8xf32>
    %41 = vector.broadcast %15 : vector<1x8xf32> to vector<8x8xf32>
    %42 = arith.addf %40, %41 : vector<8x8xf32>
    %cst_21 = arith.constant dense<0xFF800000> : vector<8xf32>
    %43 = vector.multi_reduction <maximumf>, %42, %cst_21 [1] : vector<8x8xf32> to vector<8xf32>
    %44 = vector.shape_cast %43 : vector<8xf32> to vector<8x1xf32>
    %45 = vector.broadcast %44 : vector<8x1xf32> to vector<8x8xf32>
    %46 = arith.subf %42, %45 : vector<8x8xf32>
    %47 = math.exp %46 : vector<8x8xf32>
    %cst_22 = arith.constant dense<0.000000e+00> : vector<8xf32>
    %48 = vector.multi_reduction <add>, %47, %cst_22 [1] : vector<8x8xf32> to vector<8xf32>
    %49 = vector.shape_cast %48 : vector<8xf32> to vector<8x1xf32>
    %50 = tpu.reciprocal %49 {approx = true} : vector<8x1xf32> -> vector<8x1xf32>
    %51 = vector.broadcast %50 : vector<8x1xf32> to vector<8x8xf32>
    %52 = arith.mulf %47, %51 : vector<8x8xf32>
    %cst_23 = arith.constant dense<0.000000e+00> : vector<8x8xf32>
    %53 = tpu.matmul %52, %37, %cst_23 {dimension_numbers = #tpu.dot_dimension_numbers<[1], [0], [0], [1], [0, 0, 1, 1], [], []>} : vector<8x8xf32>, vector<8x8xf32>, vector<8x8xf32> -> vector<8x8xf32>
    %54 = vector.extract_strided_slice %13 {offsets = [0, 16], sizes = [8, 8], strides = [1, 1]} : vector<8x96xf32> to vector<8x8xf32>
    %55 = vector.extract_strided_slice %13 {offsets = [0, 48], sizes = [8, 8], strides = [1, 1]} : vector<8x96xf32> to vector<8x8xf32>
    %56 = vector.extract_strided_slice %13 {offsets = [0, 80], sizes = [8, 8], strides = [1, 1]} : vector<8x96xf32> to vector<8x8xf32>
    %cst_24 = arith.constant dense<0.000000e+00> : vector<8x8xf32>
    %57 = tpu.matmul %54, %55, %cst_24 {dimension_numbers = #tpu.dot_dimension_numbers<[1], [1], [0], [0], [0, 0, 1, 0], [], []>} : vector<8x8xf32>, vector<8x8xf32>, vector<8x8xf32> -> vector<8x8xf32>
    %cst_25 = arith.constant 0.353553385 : f32
    %58 = vector.broadcast %cst_25 : f32 to vector<8x8xf32>
    %59 = arith.mulf %57, %58 : vector<8x8xf32>
    %60 = vector.broadcast %15 : vector<1x8xf32> to vector<8x8xf32>
    %61 = arith.addf %59, %60 : vector<8x8xf32>
    %cst_26 = arith.constant dense<0xFF800000> : vector<8xf32>
    %62 = vector.multi_reduction <maximumf>, %61, %cst_26 [1] : vector<8x8xf32> to vector<8xf32>
    %63 = vector.shape_cast %62 : vector<8xf32> to vector<8x1xf32>
    %64 = vector.broadcast %63 : vector<8x1xf32> to vector<8x8xf32>
    %65 = arith.subf %61, %64 : vector<8x8xf32>
    %66 = math.exp %65 : vector<8x8xf32>
    %cst_27 = arith.constant dense<0.000000e+00> : vector<8xf32>
    %67 = vector.multi_reduction <add>, %66, %cst_27 [1] : vector<8x8xf32> to vector<8xf32>
    %68 = vector.shape_cast %67 : vector<8xf32> to vector<8x1xf32>
    %69 = tpu.reciprocal %68 {approx = true} : vector<8x1xf32> -> vector<8x1xf32>
    %70 = vector.broadcast %69 : vector<8x1xf32> to vector<8x8xf32>
    %71 = arith.mulf %66, %70 : vector<8x8xf32>
    %cst_28 = arith.constant dense<0.000000e+00> : vector<8x8xf32>
    %72 = tpu.matmul %71, %56, %cst_28 {dimension_numbers = #tpu.dot_dimension_numbers<[1], [0], [0], [1], [0, 0, 1, 1], [], []>} : vector<8x8xf32>, vector<8x8xf32>, vector<8x8xf32> -> vector<8x8xf32>
    %73 = vector.extract_strided_slice %13 {offsets = [0, 24], sizes = [8, 8], strides = [1, 1]} : vector<8x96xf32> to vector<8x8xf32>
    %74 = vector.extract_strided_slice %13 {offsets = [0, 56], sizes = [8, 8], strides = [1, 1]} : vector<8x96xf32> to vector<8x8xf32>
    %75 = vector.extract_strided_slice %13 {offsets = [0, 88], sizes = [8, 8], strides = [1, 1]} : vector<8x96xf32> to vector<8x8xf32>
    %cst_29 = arith.constant dense<0.000000e+00> : vector<8x8xf32>
    %76 = tpu.matmul %73, %74, %cst_29 {dimension_numbers = #tpu.dot_dimension_numbers<[1], [1], [0], [0], [0, 0, 1, 0], [], []>} : vector<8x8xf32>, vector<8x8xf32>, vector<8x8xf32> -> vector<8x8xf32>
    %cst_30 = arith.constant 0.353553385 : f32
    %77 = vector.broadcast %cst_30 : f32 to vector<8x8xf32>
    %78 = arith.mulf %76, %77 : vector<8x8xf32>
    %79 = vector.broadcast %15 : vector<1x8xf32> to vector<8x8xf32>
    %80 = arith.addf %78, %79 : vector<8x8xf32>
    %cst_31 = arith.constant dense<0xFF800000> : vector<8xf32>
    %81 = vector.multi_reduction <maximumf>, %80, %cst_31 [1] : vector<8x8xf32> to vector<8xf32>
    %82 = vector.shape_cast %81 : vector<8xf32> to vector<8x1xf32>
    %83 = vector.broadcast %82 : vector<8x1xf32> to vector<8x8xf32>
    %84 = arith.subf %80, %83 : vector<8x8xf32>
    %85 = math.exp %84 : vector<8x8xf32>
    %cst_32 = arith.constant dense<0.000000e+00> : vector<8xf32>
    %86 = vector.multi_reduction <add>, %85, %cst_32 [1] : vector<8x8xf32> to vector<8xf32>
    %87 = vector.shape_cast %86 : vector<8xf32> to vector<8x1xf32>
    %88 = tpu.reciprocal %87 {approx = true} : vector<8x1xf32> -> vector<8x1xf32>
    %89 = vector.broadcast %88 : vector<8x1xf32> to vector<8x8xf32>
    %90 = arith.mulf %85, %89 : vector<8x8xf32>
    %cst_33 = arith.constant dense<0.000000e+00> : vector<8x8xf32>
    %91 = tpu.matmul %90, %75, %cst_33 {dimension_numbers = #tpu.dot_dimension_numbers<[1], [0], [0], [1], [0, 0, 1, 1], [], []>} : vector<8x8xf32>, vector<8x8xf32>, vector<8x8xf32> -> vector<8x8xf32>
    %92 = tpu.concatenate %34, %53, %72, %91 in 1 : vector<8x8xf32>, vector<8x8xf32>, vector<8x8xf32>, vector<8x8xf32> -> vector<8x32xf32>
    %c0_34 = arith.constant 0 : index
    %c0_35 = arith.constant 0 : index
    %c0_36 = arith.constant 0 : index
    %93 = vector.load %arg10[%c0_34, %c0_35, %c0_36] : memref<1x32x32xf32, #tpu.memory_space<vmem>>, vector<1x32x32xf32>
    %94 = vector.shape_cast %93 : vector<1x32x32xf32> to vector<32x32xf32>
    %cst_37 = arith.constant dense<0.000000e+00> : vector<8x32xf32>
    %95 = tpu.matmul %92, %94, %cst_37 {dimension_numbers = #tpu.dot_dimension_numbers<[1], [0], [0], [1], [0, 0, 1, 1], [], []>} : vector<8x32xf32>, vector<32x32xf32>, vector<8x32xf32> -> vector<8x32xf32>
    %c0_38 = arith.constant 0 : index
    %c0_39 = arith.constant 0 : index
    %c0_40 = arith.constant 0 : index
    %96 = vector.load %arg11[%c0_38, %c0_39, %c0_40] : memref<1x1x32xf32, #tpu.memory_space<vmem>>, vector<1x1x32xf32>
    %97 = vector.shape_cast %96 : vector<1x1x32xf32> to vector<1x32xf32>
    %98 = vector.broadcast %97 : vector<1x32xf32> to vector<8x32xf32>
    %99 = arith.addf %95, %98 : vector<8x32xf32>
    %100 = arith.addf %99, %3 : vector<8x32xf32>
    %c0_41 = arith.constant 0 : index
    %c0_42 = arith.constant 0 : index
    %c0_43 = arith.constant 0 : index
    %101 = vector.load %arg12[%c0_41, %c0_42, %c0_43] : memref<1x1x32xf32, #tpu.memory_space<vmem>>, vector<1x1x32xf32>
    %102 = vector.shape_cast %101 : vector<1x1x32xf32> to vector<1x32xf32>
    %c0_44 = arith.constant 0 : index
    %c0_45 = arith.constant 0 : index
    %c0_46 = arith.constant 0 : index
    %103 = vector.load %arg13[%c0_44, %c0_45, %c0_46] : memref<1x1x32xf32, #tpu.memory_space<vmem>>, vector<1x1x32xf32>
    %104 = vector.shape_cast %103 : vector<1x1x32xf32> to vector<1x32xf32>
    %cst_47 = arith.constant dense<0.000000e+00> : vector<8xf32>
    %105 = vector.multi_reduction <add>, %100, %cst_47 [1] : vector<8x32xf32> to vector<8xf32>
    %106 = vector.shape_cast %105 : vector<8xf32> to vector<8x1xf32>
    %cst_48 = arith.constant 3.200000e+01 : f32
    %107 = vector.broadcast %cst_48 : f32 to vector<8x1xf32>
    %108 = arith.divf %106, %107 : vector<8x1xf32>
    %109 = vector.broadcast %108 : vector<8x1xf32> to vector<8x32xf32>
    %110 = arith.subf %100, %109 : vector<8x32xf32>
    %111 = arith.mulf %110, %110 : vector<8x32xf32>
    %cst_49 = arith.constant dense<0.000000e+00> : vector<8xf32>
    %112 = vector.multi_reduction <add>, %111, %cst_49 [1] : vector<8x32xf32> to vector<8xf32>
    %113 = vector.shape_cast %112 : vector<8xf32> to vector<8x1xf32>
    %cst_50 = arith.constant 3.200000e+01 : f32
    %114 = vector.broadcast %cst_50 : f32 to vector<8x1xf32>
    %115 = arith.divf %113, %114 : vector<8x1xf32>
    %116 = vector.broadcast %108 : vector<8x1xf32> to vector<8x32xf32>
    %117 = arith.subf %100, %116 : vector<8x32xf32>
    %cst_51 = arith.constant 9.99999996E-13 : f32
    %118 = vector.broadcast %cst_51 : f32 to vector<8x1xf32>
    %119 = arith.addf %115, %118 : vector<8x1xf32>
    %120 = math.rsqrt %119 : vector<8x1xf32>
    %121 = vector.broadcast %120 : vector<8x1xf32> to vector<8x32xf32>
    %122 = arith.mulf %117, %121 : vector<8x32xf32>
    %123 = vector.broadcast %102 : vector<1x32xf32> to vector<8x32xf32>
    %124 = arith.mulf %122, %123 : vector<8x32xf32>
    %125 = vector.broadcast %104 : vector<1x32xf32> to vector<8x32xf32>
    %126 = arith.addf %124, %125 : vector<8x32xf32>
    %c0_52 = arith.constant 0 : index
    %c0_53 = arith.constant 0 : index
    %c0_54 = arith.constant 0 : index
    %127 = vector.load %arg14[%c0_52, %c0_53, %c0_54] : memref<1x32x64xf32, #tpu.memory_space<vmem>>, vector<1x32x64xf32>
    %128 = vector.shape_cast %127 : vector<1x32x64xf32> to vector<32x64xf32>
    %cst_55 = arith.constant dense<0.000000e+00> : vector<8x64xf32>
    %129 = tpu.matmul %126, %128, %cst_55 {dimension_numbers = #tpu.dot_dimension_numbers<[1], [0], [0], [1], [0, 0, 1, 1], [], []>} : vector<8x32xf32>, vector<32x64xf32>, vector<8x64xf32> -> vector<8x64xf32>
    %c0_56 = arith.constant 0 : index
    %c0_57 = arith.constant 0 : index
    %c0_58 = arith.constant 0 : index
    %130 = vector.load %arg15[%c0_56, %c0_57, %c0_58] : memref<1x1x64xf32, #tpu.memory_space<vmem>>, vector<1x1x64xf32>
    %131 = vector.shape_cast %130 : vector<1x1x64xf32> to vector<1x64xf32>
    %132 = vector.broadcast %131 : vector<1x64xf32> to vector<8x64xf32>
    %133 = arith.addf %129, %132 : vector<8x64xf32>
    %134 = arith.mulf %133, %133 : vector<8x64xf32>
    %135 = arith.mulf %133, %134 : vector<8x64xf32>
    %cst_59 = arith.constant 4.471500e-02 : f32
    %136 = vector.broadcast %cst_59 : f32 to vector<8x64xf32>
    %137 = arith.mulf %136, %135 : vector<8x64xf32>
    %138 = arith.addf %133, %137 : vector<8x64xf32>
    %cst_60 = arith.constant 0.797884583 : f32
    %139 = vector.broadcast %cst_60 : f32 to vector<8x64xf32>
    %140 = arith.mulf %139, %138 : vector<8x64xf32>
    %141 = math.tanh %140 : vector<8x64xf32>
    %cst_61 = arith.constant 1.000000e+00 : f32
    %142 = vector.broadcast %cst_61 : f32 to vector<8x64xf32>
    %143 = arith.addf %142, %141 : vector<8x64xf32>
    %cst_62 = arith.constant 5.000000e-01 : f32
    %144 = vector.broadcast %cst_62 : f32 to vector<8x64xf32>
    %145 = arith.mulf %144, %143 : vector<8x64xf32>
    %146 = arith.mulf %133, %145 : vector<8x64xf32>
    %c0_63 = arith.constant 0 : index
    %c0_64 = arith.constant 0 : index
    %c0_65 = arith.constant 0 : index
    %147 = vector.load %arg16[%c0_63, %c0_64, %c0_65] : memref<1x64x32xf32, #tpu.memory_space<vmem>>, vector<1x64x32xf32>
    %148 = vector.shape_cast %147 : vector<1x64x32xf32> to vector<64x32xf32>
    %cst_66 = arith.constant dense<0.000000e+00> : vector<8x32xf32>
    %149 = tpu.matmul %146, %148, %cst_66 {dimension_numbers = #tpu.dot_dimension_numbers<[1], [0], [0], [1], [0, 0, 1, 1], [], []>} : vector<8x64xf32>, vector<64x32xf32>, vector<8x32xf32> -> vector<8x32xf32>
    %c0_67 = arith.constant 0 : index
    %c0_68 = arith.constant 0 : index
    %c0_69 = arith.constant 0 : index
    %150 = vector.load %arg17[%c0_67, %c0_68, %c0_69] : memref<1x1x32xf32, #tpu.memory_space<vmem>>, vector<1x1x32xf32>
    %151 = vector.shape_cast %150 : vector<1x1x32xf32> to vector<1x32xf32>
    %152 = vector.broadcast %151 : vector<1x32xf32> to vector<8x32xf32>
    %153 = arith.addf %149, %152 : vector<8x32xf32>
    %154 = arith.addf %153, %126 : vector<8x32xf32>
    %c0_70 = arith.constant 0 : index
    %c0_71 = arith.constant 0 : index
    %c0_72 = arith.constant 0 : index
    %155 = vector.load %arg18[%c0_70, %c0_71, %c0_72] : memref<1x1x32xf32, #tpu.memory_space<vmem>>, vector<1x1x32xf32>
    %156 = vector.shape_cast %155 : vector<1x1x32xf32> to vector<1x32xf32>
    %c0_73 = arith.constant 0 : index
    %c0_74 = arith.constant 0 : index
    %c0_75 = arith.constant 0 : index
    %157 = vector.load %arg19[%c0_73, %c0_74, %c0_75] : memref<1x1x32xf32, #tpu.memory_space<vmem>>, vector<1x1x32xf32>
    %158 = vector.shape_cast %157 : vector<1x1x32xf32> to vector<1x32xf32>
    %cst_76 = arith.constant dense<0.000000e+00> : vector<8xf32>
    %159 = vector.multi_reduction <add>, %154, %cst_76 [1] : vector<8x32xf32> to vector<8xf32>
    %160 = vector.shape_cast %159 : vector<8xf32> to vector<8x1xf32>
    %cst_77 = arith.constant 3.200000e+01 : f32
    %161 = vector.broadcast %cst_77 : f32 to vector<8x1xf32>
    %162 = arith.divf %160, %161 : vector<8x1xf32>
    %163 = vector.broadcast %162 : vector<8x1xf32> to vector<8x32xf32>
    %164 = arith.subf %154, %163 : vector<8x32xf32>
    %165 = arith.mulf %164, %164 : vector<8x32xf32>
    %cst_78 = arith.constant dense<0.000000e+00> : vector<8xf32>
    %166 = vector.multi_reduction <add>, %165, %cst_78 [1] : vector<8x32xf32> to vector<8xf32>
    %167 = vector.shape_cast %166 : vector<8xf32> to vector<8x1xf32>
    %cst_79 = arith.constant 3.200000e+01 : f32
    %168 = vector.broadcast %cst_79 : f32 to vector<8x1xf32>
    %169 = arith.divf %167, %168 : vector<8x1xf32>
    %170 = vector.broadcast %162 : vector<8x1xf32> to vector<8x32xf32>
    %171 = arith.subf %154, %170 : vector<8x32xf32>
    %cst_80 = arith.constant 9.99999996E-13 : f32
    %172 = vector.broadcast %cst_80 : f32 to vector<8x1xf32>
    %173 = arith.addf %169, %172 : vector<8x1xf32>
    %174 = math.rsqrt %173 : vector<8x1xf32>
    %175 = vector.broadcast %174 : vector<8x1xf32> to vector<8x32xf32>
    %176 = arith.mulf %171, %175 : vector<8x32xf32>
    %177 = vector.broadcast %156 : vector<1x32xf32> to vector<8x32xf32>
    %178 = arith.mulf %176, %177 : vector<8x32xf32>
    %179 = vector.broadcast %158 : vector<1x32xf32> to vector<8x32xf32>
    %180 = arith.addf %178, %179 : vector<8x32xf32>
    %c0_81 = arith.constant 0 : index
    %c0_82 = arith.constant 0 : index
    %181 = vector.load %arg29[%c0_81, %c0_82] : memref<8x32xf32, #tpu.memory_space<vmem>>, vector<8x32xf32>
    tpu.vector_store %arg29[%c0_81, %c0_82], %180 {strides = array<i32>} : memref<8x32xf32, #tpu.memory_space<vmem>>, vector<8x32xf32>,
    %c1_i32 = arith.constant 1 : i32
    %182 = arith.cmpi eq, %arg1, %c1_i32 : i32
    %183 = arith.extui %182 : i1 to i32
    %c0_i32_83 = arith.constant 0 : i32
    %184 = arith.cmpi ne, %183, %c0_i32_83 : i32
    scf.if %184 {
      %c0_84 = arith.constant 0 : index
      %c0_85 = arith.constant 0 : index
      %c0_86 = arith.constant 0 : index
      %185 = vector.load %arg26[%c0_84, %c0_85, %c0_86] : memref<1x8x32xf32, #tpu.memory_space<vmem>>, vector<1x8x32xf32>
      %186 = vector.shape_cast %185 : vector<1x8x32xf32> to vector<8x32xf32>
      %187 = vector.shape_cast %180 : vector<8x32xf32> to vector<1x8x32xf32>
      tpu.vector_store %arg26[%c0_84, %c0_85, %c0_86], %187 {strides = array<i32>} : memref<1x8x32xf32, #tpu.memory_space<vmem>>, vector<1x8x32xf32>,
      %188 = vector.extract_strided_slice %180 {offsets = [0, 0], sizes = [1, 32], strides = [1, 1]} : vector<8x32xf32> to vector<1x32xf32>
      %c0_87 = arith.constant 0 : index
      %c0_88 = arith.constant 0 : index
      %189 = vector.load %arg20[%c0_87, %c0_88] : memref<32x32xf32, #tpu.memory_space<vmem>>, vector<32x32xf32>
      %cst_89 = arith.constant dense<0.000000e+00> : vector<1x32xf32>
      %190 = tpu.matmul %188, %189, %cst_89 {dimension_numbers = #tpu.dot_dimension_numbers<[1], [0], [0], [1], [0, 0, 1, 1], [], []>} : vector<1x32xf32>, vector<32x32xf32>, vector<1x32xf32> -> vector<1x32xf32>
      %c0_90 = arith.constant 0 : index
      %c0_91 = arith.constant 0 : index
      %191 = vector.load %arg21[%c0_90, %c0_91] : memref<1x32xf32, #tpu.memory_space<vmem>>, vector<1x32xf32>
      %192 = arith.addf %190, %191 : vector<1x32xf32>
      %193 = math.tanh %192 : vector<1x32xf32>
      %c0_92 = arith.constant 0 : index
      %c0_93 = arith.constant 0 : index
      %c0_94 = arith.constant 0 : index
      %194 = vector.load %arg27[%c0_92, %c0_93, %c0_94] : memref<1x1x32xf32, #tpu.memory_space<vmem>>, vector<1x1x32xf32>
      %195 = vector.shape_cast %194 : vector<1x1x32xf32> to vector<1x32xf32>
      %196 = vector.shape_cast %193 : vector<1x32xf32> to vector<1x1x32xf32>
      tpu.vector_store %arg27[%c0_92, %c0_93, %c0_94], %196 {strides = array<i32>} : memref<1x1x32xf32, #tpu.memory_space<vmem>>, vector<1x1x32xf32>,
      %c0_95 = arith.constant 0 : index
      %c0_96 = arith.constant 0 : index
      %197 = vector.load %arg22[%c0_95, %c0_96] : memref<32x3xf32, #tpu.memory_space<vmem>>, vector<32x3xf32>
      %cst_97 = arith.constant dense<0.000000e+00> : vector<1x3xf32>
      %198 = tpu.matmul %193, %197, %cst_97 {dimension_numbers = #tpu.dot_dimension_numbers<[1], [0], [0], [1], [0, 0, 1, 1], [], []>} : vector<1x32xf32>, vector<32x3xf32>, vector<1x3xf32> -> vector<1x3xf32>
      %c0_98 = arith.constant 0 : index
      %c0_99 = arith.constant 0 : index
      %199 = vector.load %arg23[%c0_98, %c0_99] : memref<1x3xf32, #tpu.memory_space<vmem>>, vector<1x3xf32>
      %200 = arith.addf %198, %199 : vector<1x3xf32>
      %c0_100 = arith.constant 0 : index
      %c0_101 = arith.constant 0 : index
      %c0_102 = arith.constant 0 : index
      %201 = vector.load %arg28[%c0_100, %c0_101, %c0_102] : memref<1x1x3xf32, #tpu.memory_space<vmem>>, vector<1x1x3xf32>
      %202 = vector.shape_cast %201 : vector<1x1x3xf32> to vector<1x3xf32>
      %203 = vector.shape_cast %200 : vector<1x3xf32> to vector<1x1x3xf32>
      tpu.vector_store %arg28[%c0_100, %c0_101, %c0_102], %203 {strides = array<i32>} : memref<1x1x3xf32, #tpu.memory_space<vmem>>, vector<1x1x3xf32>,
    } else {
    }
    return
  }
  func.func @transform_0(%arg0: i32, %arg1: i32) -> i32 {
    %c0_i32 = arith.constant 0 : i32
    %c0_i32_0 = arith.constant 0 : i32
    return %c0_i32 : i32
  }
  func.func @transform_1(%arg0: i32, %arg1: i32) -> (i32, i32, i32) {
    %c0_i32 = arith.constant 0 : i32
    %c0_i32_0 = arith.constant 0 : i32
    %c0_i32_1 = arith.constant 0 : i32
    return %arg0, %c0_i32, %c0_i32_0 : i32, i32, i32
  }
  func.func @transform_2(%arg0: i32, %arg1: i32) -> (i32, i32, i32) {
    %c0_i32 = arith.constant 0 : i32
    %c0_i32_0 = arith.constant 0 : i32
    %c0_i32_1 = arith.constant 0 : i32
    return %arg0, %c0_i32, %c0_i32_0 : i32, i32, i32
  }
  func.func @transform_3(%arg0: i32, %arg1: i32) -> (i32, i32, i32) {
    %c0_i32 = arith.constant 0 : i32
    %c0_i32_0 = arith.constant 0 : i32
    %c0_i32_1 = arith.constant 0 : i32
    return %arg0, %c0_i32, %c0_i32_0 : i32, i32, i32
  }
  func.func @transform_4(%arg0: i32, %arg1: i32) -> (i32, i32) {
    %c0_i32 = arith.constant 0 : i32
    %c0_i32_0 = arith.constant 0 : i32
    %c0_i32_1 = arith.constant 0 : i32
    return %c0_i32, %c0_i32_0 : i32, i32
  }
  func.func @transform_5(%arg0: i32, %arg1: i32) -> (i32, i32) {
    %c0_i32 = arith.constant 0 : i32
    %c0_i32_0 = arith.constant 0 : i32
    %c0_i32_1 = arith.constant 0 : i32
    return %c0_i32, %c0_i32_0 : i32, i32
  }
  func.func @transform_6(%arg0: i32, %arg1: i32) -> (i32, i32, i32) {
    %c0_i32 = arith.constant 0 : i32
    %c0_i32_0 = arith.constant 0 : i32
    %c0_i32_1 = arith.constant 0 : i32
    return %arg1, %c0_i32, %c0_i32_0 : i32, i32, i32
  }
  func.func @transform_7(%arg0: i32, %arg1: i32) -> (i32, i32, i32) {
    %c0_i32 = arith.constant 0 : i32
    %c0_i32_0 = arith.constant 0 : i32
    %c0_i32_1 = arith.constant 0 : i32
    return %arg1, %c0_i32, %c0_i32_0 : i32, i32, i32
  }
  func.func @transform_8(%arg0: i32, %arg1: i32) -> (i32, i32, i32) {
    %c0_i32 = arith.constant 0 : i32
    %c0_i32_0 = arith.constant 0 : i32
    %c0_i32_1 = arith.constant 0 : i32
    return %arg1, %c0_i32, %c0_i32_0 : i32, i32, i32
  }
  func.func @transform_9(%arg0: i32, %arg1: i32) -> (i32, i32, i32) {
    %c0_i32 = arith.constant 0 : i32
    %c0_i32_0 = arith.constant 0 : i32
    %c0_i32_1 = arith.constant 0 : i32
    return %arg1, %c0_i32, %c0_i32_0 : i32, i32, i32
  }
  func.func @transform_10(%arg0: i32, %arg1: i32) -> (i32, i32, i32) {
    %c0_i32 = arith.constant 0 : i32
    %c0_i32_0 = arith.constant 0 : i32
    %c0_i32_1 = arith.constant 0 : i32
    return %arg1, %c0_i32, %c0_i32_0 : i32, i32, i32
  }
  func.func @transform_11(%arg0: i32, %arg1: i32) -> (i32, i32, i32) {
    %c0_i32 = arith.constant 0 : i32
    %c0_i32_0 = arith.constant 0 : i32
    %c0_i32_1 = arith.constant 0 : i32
    return %arg1, %c0_i32, %c0_i32_0 : i32, i32, i32
  }
  func.func @transform_12(%arg0: i32, %arg1: i32) -> (i32, i32, i32) {
    %c0_i32 = arith.constant 0 : i32
    %c0_i32_0 = arith.constant 0 : i32
    %c0_i32_1 = arith.constant 0 : i32
    return %arg1, %c0_i32, %c0_i32_0 : i32, i32, i32
  }
  func.func @transform_13(%arg0: i32, %arg1: i32) -> (i32, i32, i32) {
    %c0_i32 = arith.constant 0 : i32
    %c0_i32_0 = arith.constant 0 : i32
    %c0_i32_1 = arith.constant 0 : i32
    return %arg1, %c0_i32, %c0_i32_0 : i32, i32, i32
  }
  func.func @transform_14(%arg0: i32, %arg1: i32) -> (i32, i32, i32) {
    %c0_i32 = arith.constant 0 : i32
    %c0_i32_0 = arith.constant 0 : i32
    %c0_i32_1 = arith.constant 0 : i32
    return %arg1, %c0_i32, %c0_i32_0 : i32, i32, i32
  }
  func.func @transform_15(%arg0: i32, %arg1: i32) -> (i32, i32, i32) {
    %c0_i32 = arith.constant 0 : i32
    %c0_i32_0 = arith.constant 0 : i32
    %c0_i32_1 = arith.constant 0 : i32
    return %arg1, %c0_i32, %c0_i32_0 : i32, i32, i32
  }
  func.func @transform_16(%arg0: i32, %arg1: i32) -> (i32, i32, i32) {
    %c0_i32 = arith.constant 0 : i32
    %c0_i32_0 = arith.constant 0 : i32
    %c0_i32_1 = arith.constant 0 : i32
    return %arg1, %c0_i32, %c0_i32_0 : i32, i32, i32
  }
  func.func @transform_17(%arg0: i32, %arg1: i32) -> (i32, i32, i32) {
    %c0_i32 = arith.constant 0 : i32
    %c0_i32_0 = arith.constant 0 : i32
    %c0_i32_1 = arith.constant 0 : i32
    return %arg1, %c0_i32, %c0_i32_0 : i32, i32, i32
  }
  func.func @transform_18(%arg0: i32, %arg1: i32) -> (i32, i32) {
    %c0_i32 = arith.constant 0 : i32
    %c0_i32_0 = arith.constant 0 : i32
    %c0_i32_1 = arith.constant 0 : i32
    return %c0_i32, %c0_i32_0 : i32, i32
  }
  func.func @transform_19(%arg0: i32, %arg1: i32) -> (i32, i32) {
    %c0_i32 = arith.constant 0 : i32
    %c0_i32_0 = arith.constant 0 : i32
    %c0_i32_1 = arith.constant 0 : i32
    return %c0_i32, %c0_i32_0 : i32, i32
  }
  func.func @transform_20(%arg0: i32, %arg1: i32) -> (i32, i32) {
    %c0_i32 = arith.constant 0 : i32
    %c0_i32_0 = arith.constant 0 : i32
    %c0_i32_1 = arith.constant 0 : i32
    return %c0_i32, %c0_i32_0 : i32, i32
  }
  func.func @transform_21(%arg0: i32, %arg1: i32) -> (i32, i32) {
    %c0_i32 = arith.constant 0 : i32
    %c0_i32_0 = arith.constant 0 : i32
    %c0_i32_1 = arith.constant 0 : i32
    return %c0_i32, %c0_i32_0 : i32, i32
  }
  func.func @transform_22(%arg0: i32, %arg1: i32) -> (i32, i32, i32) {
    %c0_i32 = arith.constant 0 : i32
    %c0_i32_0 = arith.constant 0 : i32
    %c0_i32_1 = arith.constant 0 : i32
    return %arg0, %c0_i32, %c0_i32_0 : i32, i32, i32
  }
  func.func @transform_23(%arg0: i32, %arg1: i32) -> (i32, i32, i32) {
    %c2_i32 = arith.constant 2 : i32
    %0 = arith.muli %arg1, %c2_i32 : i32
    %1 = arith.addi %0, %arg0 : i32
    %c0_i32 = arith.constant 0 : i32
    %c0_i32_0 = arith.constant 0 : i32
    %c0_i32_1 = arith.constant 0 : i32
    return %1, %c0_i32, %c0_i32_0 : i32, i32, i32
  }
  func.func @transform_24(%arg0: i32, %arg1: i32) -> (i32, i32, i32) {
    %c0_i32 = arith.constant 0 : i32
    %c0_i32_0 = arith.constant 0 : i32
    %c0_i32_1 = arith.constant 0 : i32
    return %arg0, %c0_i32, %c0_i32_0 : i32, i32, i32
  }
  func.func @transform_25(%arg0: i32, %arg1: i32) -> (i32, i32, i32) {
    %c0_i32 = arith.constant 0 : i32
    %c0_i32_0 = arith.constant 0 : i32
    %c0_i32_1 = arith.constant 0 : i32
    return %arg0, %c0_i32, %c0_i32_0 : i32, i32, i32
  }
  func.func @transform_26(%arg0: i32, %arg1: i32) -> (i32, i32, i32) {
    %c0_i32 = arith.constant 0 : i32
    %c0_i32_0 = arith.constant 0 : i32
    %c0_i32_1 = arith.constant 0 : i32
    return %arg0, %c0_i32, %c0_i32_0 : i32, i32, i32
  }
}

</mosaic_0001>

<bundles_post_ra>
// kernel: tpu_custom_call.1
= control target key start
LH: loop header
LB: loop body
LE: loop exit
PB: predicated region body
PF: predicated region fallthrough
CT: control target
= control target key end

     0   :  { %s5609_s0 = inlined_call_operand.<no memory space> [shape: f32[1], index: 0, kind: input, shape index: {}]   ;;  %s5610_s1 = inlined_call_operand.hbm [shape: f32[2,8,32], index: 1, kind: input, shape index: {}]   ;;  %s5611_s2 = inlined_call_operand.hbm [shape: f32[2,8,32], index: 2, kind: input, shape index: {}]   ;;  %s5612_s3 = inlined_call_operand.hbm [shape: f32[2,1,8], index: 3, kind: input, shape index: {}]   ;;  %s5613_s4 = inlined_call_operand.hbm [shape: f32[1,32], index: 4, kind: input, shape index: {}]   ;;  %s5614_s5 = inlined_call_operand.hbm [shape: f32[1,32], index: 5, kind: input, shape index: {}]   ;;  %s5615_s6 = inlined_call_operand.vmem [shape: f32[2,32,96], index: 6, kind: input, shape index: {}]   ;;  %s5616_s7 = inlined_call_operand.hbm [shape: f32[2,1,96], index: 7, kind: input, shape index: {}]   ;;  %s5617_s8 = inlined_call_operand.vmem [shape: f32[2,32,32], index: 8, kind: input, shape index: {}]   ;;  %s5618_s9 = inlined_call_operand.hbm [shape: f32[2,1,32], index: 9, kind: input, shape index: {}]   ;;  %s5619_s10 = inlined_call_operand.hbm [shape: f32[2,1,32], index: 10, kind: input, shape index: {}]   ;;  %s5620_s11 = inlined_call_operand.hbm [shape: f32[2,1,32], index: 11, kind: input, shape index: {}]   ;;  %s5621_s12 = inlined_call_operand.vmem [shape: f32[2,32,64], index: 12, kind: input, shape index: {}]   ;;  %s5622_s13 = inlined_call_operand.hbm [shape: f32[2,1,64], index: 13, kind: input, shape index: {}]   ;;  %s5623_s14 = inlined_call_operand.vmem [shape: f32[2,64,32], index: 14, kind: input, shape index: {}]   ;;  %s5624_s15 = inlined_call_operand.hbm [shape: f32[2,1,32], index: 15, kind: input, shape index: {}]   ;;  %s5625_s16 = inlined_call_operand.hbm [shape: f32[2,1,32], index: 16, kind: input, shape index: {}]   ;;  %s5626_s17 = inlined_call_operand.hbm [shape: f32[2,1,32], index: 17, kind: input, shape index: {}]   ;;  %s5627_s18 = inlined_call_operand.vmem [shape: f32[32,32], index: 18, kind: input, shape index: {}]   ;;  %s5628_s19 = inlined_call_operand.vmem [shape: f32[1,32], index: 19, kind: input, shape index: {}]   ;;  %s5629_s20 = inlined_call_operand.vmem [shape: f32[32,3], index: 20, kind: input, shape index: {}]   ;;  %s5630_s21 = inlined_call_operand.vmem [shape: f32[1,3], index: 21, kind: input, shape index: {}]   ;;  %s5631_s22 = inlined_call_operand.hbm [shape: f32[2,8,32], index: 22, kind: output, shape index: {0}]   ;;  %s5632_s23 = inlined_call_operand.hbm [shape: f32[4,8,32], index: 23, kind: output, shape index: {1}]   ;;  %s5633_s24 = inlined_call_operand.hbm [shape: f32[2,8,32], index: 24, kind: output, shape index: {2}]   ;;  %s5634_s25 = inlined_call_operand.hbm [shape: f32[2,1,32], index: 25, kind: output, shape index: {3}]   ;;  %s5635_s26 = inlined_call_operand.hbm [shape: f32[2,1,3], index: 26, kind: output, shape index: {4}]  }
   0x1   :  { %5710 = sst [smem:[#allocation64_spill]] %s5610_s1 }
   0x2   :  { %5711 = sst [smem:[#allocation65_spill]] %s5611_s2 }
   0x3   :  { %5712 = sst [smem:[#allocation66_spill]] %s5612_s3 }
   0x4   :  { %5713 = sst [smem:[#allocation67_spill]] %s5613_s4 }
   0x5   :  { %5714 = sst [smem:[#allocation68_spill]] %s5614_s5 }
   0x6   :  { %5715 = sst [smem:[#allocation69_spill]] %s5615_s6 }
   0x7   :  { %5716 = sst [smem:[#allocation70_spill]] %s5616_s7 }
   0x8   :  { %5717 = sst [smem:[#allocation71_spill]] %s5617_s8 }
   0x9   :  { %5718 = sst [smem:[#allocation72_spill]] %s5618_s9 }
   0xa   :  { %5719 = sst [smem:[#allocation73_spill]] %s5619_s10 }
   0xb   :  { %5720 = sst [smem:[#allocation74_spill]] %s5620_s11 }
   0xc   :  { %5721 = sst [smem:[#allocation75_spill]] %s5621_s12 }
   0xd   :  { %5722 = sst [smem:[#allocation76_spill]] %s5622_s13 }
   0xe   :  { %5723 = sst [smem:[#allocation77_spill]] %s5623_s14 }
   0xf   :  { %5724 = sst [smem:[#allocation78_spill]] %s5624_s15 }
  0x10   :  { %5725 = sst [smem:[#allocation79_spill]] %s5625_s16 }
  0x11   :  { %5726 = sst [smem:[#allocation80_spill]] %s5626_s17 }
  0x12   :  { %5727 = sst [smem:[#allocation81_spill]] %s5627_s18 }
  0x13   :  { %5728 = sst [smem:[#allocation82_spill]] %s5628_s19 }
  0x14   :  { %5729 = sst [smem:[#allocation83_spill]] %s5629_s20 }
  0x15   :  { %5730 = sst [smem:[#allocation84_spill]] %s5630_s21 }
  0x16   :  { %5731 = sst [smem:[#allocation85_spill]] %s5631_s22 }
  0x17   :  { %5732 = sst [smem:[#allocation86_spill]] %s5632_s23 }
  0x18   :  { %5733 = sst [smem:[#allocation87_spill]] %s5633_s24 }
  0x19   :  { %5734 = sst [smem:[#allocation88_spill]] %s5634_s25 }
  0x1a   :  { %5735 = sst [smem:[#allocation89_spill]] %s5635_s26 }
  0x1b   :  { %33 = vsyncpa [#allocation5], 0 }
  0x1c   :  { %35 = vsyncpa [#allocation5 + $0x1], 0 }
  0x1d   :  { %36 = vsyncpa [#allocation8], 0 }
  0x1e   :  { %38 = vsyncpa [#allocation8 + $0x1], 0 }
  0x1f   :  { %39 = vsyncpa [#allocation11], 0 }
  0x20   :  { %40 = vsyncpa [#allocation14], 0 }
  0x21   :  { %42 = vsyncpa [#allocation14 + $0x1], 0 }
  0x22   :  { %43 = vsyncpa [#allocation17], 0 }
  0x23   :  { %45 = vsyncpa [#allocation17 + $0x1], 0 }
  0x24   :  { %46 = vsyncpa [#allocation20], 0 }
  0x25   :  { %48 = vsyncpa [#allocation20 + $0x1], 0 }
  0x26   :  { %49 = vsyncpa [#allocation23], 0 }
  0x27   :  { %51 = vsyncpa [#allocation23 + $0x1], 0 }
  0x28   :  { %52 = vsyncpa [#allocation6], 0 }
  0x29   :  { %54 = vsyncpa [#allocation6 + $0x1], 0 }
  0x2a   :  { %55 = vsyncpa [#allocation27], 0 }
  0x2b   :  { %57 = vsyncpa [#allocation27 + $0x1], 0 }
  0x2c   :  { %58 = vsyncpa [#allocation30], 0 }
  0x2d   :  { %60 = vsyncpa [#allocation30 + $0x1], 0  ;;  %s4547_s27 = smov 0   ;;  %s4549_s3 = smov 0  }
  0x2e   :  { %s4551_s7 = smov 0   ;;  %s4553_s28 = smov 0  }
  0x2f   :  { %s4555_s8 = smov 0   ;;  %s4557_s4 = smov 0  }
  0x30   :  { %s4559_s29 = smov 0   ;;  %s4561_s0 = smov 0  }
  0x31   :  { %s4563_s9 = smov 0   ;;  %s4565_s30 = smov 0  }
  0x32   :  { %s4567_s2 = smov 0   ;;  %s4569_s5 = smov 0  }
  0x33   :  { %s4571_s10 = smov 0   ;;  %s4573_s6 = smov 0  }
  0x34 LB: > { %5736 = sst [smem:[#allocation43_spill]] %s4328_s7  ;;  %s4616_s1 = sadd.s32 4294967295, %s4372_s6   ;;  %s4372_s6 = sphi %s4573_s6, %s66_s6   ;;  %s4368_s10 = sphi %s4571_s10, %s5886_s10   ;;  %s4364_s5 = sphi %s4569_s5, %s5885_s5   ;;  %s4360_s2 = sphi %s4567_s2, %s5884_s2   ;;  %s4356_s30 = sphi %s4565_s30, %s5883_s30   ;;  %s4352_s9 = sphi %s4563_s9, %s5874_s9   ;;  %s4348_s0 = sphi %s4561_s0, %s5882_s0   ;;  %s4344_s29 = sphi %s4559_s29, %s5881_s29   ;;  %s4340_s4 = sphi %s4557_s4, %s5872_s4   ;;  %s4336_s8 = sphi %s4555_s8, %s5871_s8   ;;  %s4332_s28 = sphi %s4553_s28, %s5880_s28   ;;  %s4328_s7 = sphi %s4551_s7, %s5869_s7   ;;  %s4324_s3 = sphi %s4549_s3, %s5879_s3   ;;  %s4320_s27 = sphi %s4547_s27, %s5878_s27  }
  0x35   : > { %5737 = sst [smem:[#allocation44_spill]] %s4336_s8  ;;  %p265_p0 = scmp.ne.s32.totalorder %s4336_s8, %s4332_s28 }
  0x36   : > { %5738 = sst [smem:[#allocation45_spill]] %s4340_s4  ;;  %p5655_p1 = scmp.eq.s32.totalorder %s4616_s1, 0 }
  0x37   : > { %5739 = sst [smem:[#allocation46_spill]] %s4344_s29  ;;  %p5654_p2 = scmp.eq.s32.totalorder %s4616_s1, 3 }
  0x38   : > { %5740 = sst [smem:[#allocation47_spill]] %s4352_s9  ;;  %p662_p3 = scmp.ne.s32.totalorder %s4328_s7, %s4324_s3 }
  0x39   : > { %5741 = sst [smem:[#allocation48_spill]] %s4356_s30  ;;  %p4626_p4 = por %p265_p0, %p5655_p1 }
  0x3a   : > { %5742 = sst [smem:[#allocation49_spill]] %s4360_s2  ;;  %p4634_p6 = por %p662_p3, %p5654_p2 }
  0x3b   : > { %5743 = sst [smem:[#allocation50_spill]] %s4364_s5  ;;  %p3145_p7 = scmp.ge.s32.totalorder %s4372_s6, 1 }
  0x3c   : > { %5744 = sst [smem:[#allocation51_spill]] %s4372_s6  ;;  %p754_p8 = scmp.lt.s32.totalorder %s4372_s6, 5 }
  0x3d   : > { %5745 = sst [smem:[#allocation52_spill]] %s4616_s1  ;;  %s4374_s28 = smov [#allocation10]  }
  0x3e   : > { %s5746_s24 = scalar_select %p4626_p4, 1, 0 }
  0x3f   : > { %s5748_s22 = scalar_select %p4634_p6, 1, 0 }
  0x40   : > { %5747 = sst [smem:[#allocation53_spill]] %s5746_s24  ;;  %p4640_p9 = pnand %p3145_p7, %p754_p8 }
  0x41   : > { %5749 = sst [smem:[#allocation54_spill]] %s5748_s22  ;;  %s770_s26 = sshll.u32 %s4374_s28, 4  ;;  %s771_s26 = int_to_ptr.vmem [resolvable:$true] %s770_s26 }
  0x42   : > { %s5750_s25 = scalar_select %p4640_p9, 1, 0 }
  0x43   : > { %p3469_p10 = pneg %p4640_p9  ;;  %s5752_s22 = sld [smem:[#allocation67_spill]] }
  0x45   : > { %p4648_p11 = pnand %p3469_p10, %p5655_p1 }
  0x47   : > { %s5751_s23 = scalar_select %p4648_p11, 1, 0 }
  0x48   : > { %p5676_p13 = pneg %p4648_p11 }
  0x49   : > { %s3692_s19 = scalar_lea.hbm %s5752_s22, 16 }
  0x4a   : > { %p3693_p12 = scmp.ne.s32.totalorder %s5752_s22, %s3692_s19  ;;  %p3699_p7 = scmp.lt.u32.totalorder %s3692_s19, %s5752_s22 }
  0x4c   : > { %p3695_p0 = pnand %p5676_p13, %p3693_p12 }
  0x4e   : > { %p3696_p3 = pneg %p3695_p0 }
  0x50   : > { %p3701_p8 = pnand %p3699_p7, %p3696_p3 }
  0x52   : > { %3704 = shalt.err (!%p3701_p8)
}
  0x53   : > { %s3705_s21 = scalar_lea.vmem %s771_s26, 16  ;;  %s3712_s18 = scalar_lea.vmem %s771_s26, 32 }
  0x54   : > { %p3706_p10 = scmp.ne.s32.totalorder %s771_s26, %s3705_s21  ;;  %p3713_p1 = scmp.lt.s32.totalorder %s771_s26, %s771_s26 }
  0x55   : > { %p3714_p6 = scmp.lt.s32.totalorder %s3712_s18, %s3705_s21 }
  0x56   : > { %p3708_p5 = pnand %p3706_p10, %p5676_p13 }
  0x57   : > { %p3715_p4 = por %p3714_p6, %p3713_p1 }
  0x58   : > { %p3709_p2 = pneg %p3708_p5 }
  0x5a   : > { %p3716_p9 = pnand %p3715_p4, %p3709_p2 }
  0x5c   : > { %3719 = shalt.err (!%p3716_p9)
}
  0x5d   : > { %3472 = dma.hbm_to_vmem [thread:$0]  (!%p4648_p11), %s5752_s22, 16, %s771_s26, [#allocation11]  }
  0x5e   : > { %s75_s2 = sadd.s32 1, %s4364_s5  ;;  %s78_s28 = sadd.s32 1, %s4368_s10 }
  0x5f   : > { %p76_p1 = scmp.ge.s32.totalorder %s75_s2, 2  ;;  %s106_s21 = sadd.s32 1, %s4352_s9 }
  0x60   : > { %p113_p2 = scmp.ne.s32.totalorder %s4352_s9, %s4348_s0  ;;  %p114_p4 = scmp.eq.s32.totalorder %s4372_s6, 0 }
  0x61   : > { %s5888_s2 = smov (%p76_p1, %s75_s2), 0  ;;  %s5890_s28 = smov (!%p76_p1, %s78_s28), %s4368_s10 }
  0x62   : > { %5753 = sst [smem:[#allocation55_spill]] %s5888_s2  ;;  %p119_p5 = scmp.ne.s32.totalorder %s4348_s0, %s4344_s29 }
  0x63   : > { %p80_p6 = scmp.ge.s32.totalorder %s5890_s28, 2  ;;  %s249_s26 = ssub.s32 %s4364_s5, %s5888_s2 }
  0x64   : > { %p4693_p9 = por %p114_p4, %p113_p2  ;;  %p5755_p12 = scmp.eq.s32.totalorder %s4616_s1, 0 }
  0x65   : > { %s5892_s28 = smov (%p80_p6, %s5890_s28), 0  ;;  %p250_p3 = scmp.eq.s32.totalorder %s249_s26, 0 }
  0x66   : > { %p4702_p0 = por %p5755_p12, %p119_p5  ;;  %5758 = sst [smem:[#allocation57_spill]] %s5892_s28 }
  0x67   : > { %s252_s14 = sadd.s32 1, %s4340_s4  ;;  %s103_s19 = ssub.s32 %s4368_s10, %s5892_s28 }
  0x68   : > { %s5756_s20 = scalar_select %p4702_p0, 1, 0 }
  0x69   : > { %p259_p7 = scmp.ne.s32.totalorder %s4340_s4, %s4336_s8  ;;  %p104_p8 = scmp.eq.s32.totalorder %s103_s19, 0 }
  0x6a   : > { %5757 = sst [smem:[#allocation56_spill]] %s5756_s20  ;;  %p5759_p10 = scmp.eq.s32.totalorder %s4616_s1, 3 }
  0x6b   : > { %s4723_s12 = scalar_select %p250_p3, %s4340_s4, %s252_s14  }
  0x6c   : > { %p4718_p1 = por %p5759_p10, %p113_p2  ;;  %p4730_p6 = por %p259_p7, %p114_p4 }
  0x6d   : > { %5762 = sst [smem:[#allocation59_spill]] %s4723_s12  ;;  %s5765_s19 = sadd.s32 4294967294, %s4372_s6  }
  0x6e   : > { %s5760_s22 = scalar_select %p4718_p1, 1, 0 }
  0x6f   : > { %s4726_s30 = scalar_select %p104_p8, %s4352_s9, %s106_s21  }
  0x70   : > { %5761 = sst [smem:[#allocation58_spill]] %s5760_s22  ;;  %p639_p12 = scmp.eq.s32.totalorder %s5765_s19, 3 }
  0x71   : > { %5763 = sst [smem:[#allocation60_spill]] %s4726_s30  ;;  %s3143_s24 = sshll.u32 %s4364_s5, 1 }
  0x72   : > { %s3144_s8 = sshll.u32 %s5888_s2, 1  ;;  %p4741_p2 = por %p639_p12, %p119_p5 }
  0x73   : > { %s646_s21 = sadd.s32 %s4368_s10, %s3143_s24  ;;  %s648_s30 = sadd.s32 %s3144_s8, %s5892_s28 }
  0x74   : > { %s5766_s14 = scalar_select %p4741_p2, 1, 0 }
  0x75   : > { %p5768_p3 = scmp.ne.s32.totalorder %s4324_s3, %s4320_s27  ;;  %s649_s22 = ssub.s32 %s646_s21, %s648_s30 }
  0x76   : > { %5767 = sst [smem:[#allocation61_spill]] %s5766_s14  ;;  %p3528_p4 = scmp.lt.s32.totalorder %s4372_s6, 4 }
  0x77   : > { %p4750_p8 = por %p5768_p3, %p639_p12  ;;  %p650_p7 = scmp.eq.s32.totalorder %s649_s22, 0 }
  0x78   : > { %s4756_s19 = sand.u32 1, %s4352_s9   ;;  %s5678_s29 = sshll.u32 %s4368_s10, 7 }
  0x79   : > { %s5769_s12 = scalar_select %p4750_p8, 1, 0 }
  0x7a   : > { %s5675_s2 = sshll.u32 %s4756_s19, 3  ;;  %s5771_s1 = sadd.s32 1, %s4328_s7 }
  0x7b   : > { %5770 = sst [smem:[#allocation62_spill]] %s5769_s12  ;;  %p4767_p5 = pnand %p3528_p4, %p4693_p9 }
  0x7c   : > { %s4763_s20 = scalar_select %p650_p7, %s4328_s7, %s5771_s1  }
  0x7d   : > { %s5773_s24 = scalar_select %p4767_p5, 1, 0 }
  0x7e   : > { %5772 = sst [smem:[#allocation63_spill]] %s4763_s20  ;;  %s4772_s27 = sand.u32 1, %s4372_s6  }
  0x7f   : > { %s5774_s30 = sld [smem:[#allocation65_spill]]  ;;  %s826_s1 = scalar_lea.vmem [#allocation7], %s5675_s2 }
  0x80   : > { %s833_s18 = sshll.u32 %s826_s1, 4  ;;  %p4785_p9 = pnand %p3528_p4, %p4730_p6  ;;  %s4789_s18 = int_to_ptr.vmem [resolvable:$true] %s833_s18 }
  0x81   : > { %s5684_s20 = scalar_lea.sflag [#allocation8], %s4772_s27  ;;  %p4796_p12 = pneg %p4767_p5 }
  0x82   : > { %s5776_s9 = scalar_select %p4785_p9, 1, 0 }
  0x83   : > { %s5777_s8 = scalar_select %p4796_p12, 1, 0 }
  0x85   : > { %s5775_s21 = smov %s5774_s30  ;;  %s4779_s28 = scalar_lea.hbm %s5774_s30, %s5678_s29 }
  0x86   : > { %s3720_s7 = scalar_lea.hbm %s4779_s28, 128  ;;  %s3725_s30 = scalar_lea.hbm %s5775_s21, 256 }
  0x87   : > { %p3721_p10 = scmp.ne.s32.totalorder %s4779_s28, %s3720_s7  ;;  %p3726_p6 = scmp.lt.u32.totalorder %s4779_s28, %s5775_s21 }
  0x88   : > { %p3727_p4 = scmp.lt.u32.totalorder %s3725_s30, %s3720_s7  ;;  %p3729_p8 = scmp.lt.u32.totalorder %s3720_s7, %s4779_s28 }
  0x89   : > { %p3723_p3 = pnand %p4796_p12, %p3721_p10 }
  0x8a   : > { %p3728_p13 = por %p3727_p4, %p3726_p6 }
  0x8b   : > { %p3724_p7 = pneg %p3723_p3 }
  0x8c   : > { %p3730_p2 = por %p3729_p8, %p3728_p13 }
  0x8e   : > { %p3731_p1 = pnand %p3730_p2, %p3724_p7 }
  0x90   : > { %3734 = shalt.err (!%p3731_p1)
}
  0x91   : > { %s3735_s29 = scalar_lea.vmem %s4789_s18, 128  ;;  %s4375_s22 = smov [#allocation7]  }
  0x92   : > { %p3736_p10 = scmp.ne.s32.totalorder %s4789_s18, %s3735_s29  ;;  %s3740_s26 = sshll.u32 %s4375_s22, 4  ;;  %s3741_s26 = int_to_ptr.vmem [resolvable:$false] %s3740_s26 }
  0x93   : > { %s3742_s2 = scalar_lea.vmem %s3741_s26, 256  ;;  %p3743_p11 = scmp.lt.s32.totalorder %s4789_s18, %s3741_s26 }
  0x94   : > { %p3738_p3 = pnand %p3736_p10, %p4796_p12  ;;  %p3744_p9 = scmp.lt.s32.totalorder %s3742_s2, %s3735_s29 }
  0x96   : > { %p3739_p0 = pneg %p3738_p3  ;;  %p3745_p6 = por %p3744_p9, %p3743_p11 }
  0x98   : > { %p3746_p4 = pnand %p3745_p6, %p3739_p0 }
  0x9a   : > { %3749 = shalt.err (!%p3746_p4)
}
  0x9b   : > { %3482 = dma.hbm_to_vmem [thread:$0]  (!%p4767_p5), %s4779_s28, 128, %s4789_s18, %s5684_s20  }
  0x9c   : > { %s4822_s7 = sand.u32 1, %s4340_s4   ;;  %s4825_s30 = sshll.u32 %s4364_s5, 4 }
  0x9d   : > { %s5778_s22 = sld [smem:[#allocation70_spill]]  ;;  %s868_s2 = scalar_lea.vmem [#allocation13], %s4822_s7 }
  0x9e   : > { %s875_s21 = sshll.u32 %s868_s2, 4  ;;  %p5779_p13 = scmp.ne.s32.totalorder %s5776_s9, 0  ;;  %s4834_s21 = int_to_ptr.vmem [resolvable:$true] %s875_s21 }
  0xa0   : > { %p4841_p0 = pneg %p5779_p13 }
  0xa2   : > { %s5780_s20 = scalar_select %p4841_p0, 1, 0 }
  0xa3   : > { %s4831_s26 = scalar_lea.hbm %s5778_s22, %s4825_s30  ;;  %s3755_s5 = scalar_lea.hbm %s5778_s22, 32 }
  0xa4   : > { %s3750_s18 = scalar_lea.hbm %s4831_s26, 16  ;;  %p3756_p8 = scmp.lt.u32.totalorder %s4831_s26, %s5778_s22 }
  0xa5   : > { %p3751_p11 = scmp.ne.s32.totalorder %s4831_s26, %s3750_s18  ;;  %p3757_p9 = scmp.lt.u32.totalorder %s3755_s5, %s3750_s18 }
  0xa6   : > { %p3759_p10 = scmp.lt.u32.totalorder %s3750_s18, %s4831_s26 }
  0xa7   : > { %p3753_p1 = pnand %p4841_p0, %p3751_p11  ;;  %p3758_p7 = por %p3757_p9, %p3756_p8 }
  0xa9   : > { %p3754_p2 = pneg %p3753_p1  ;;  %p3760_p3 = por %p3759_p10, %p3758_p7 }
  0xab   : > { %p3761_p6 = pnand %p3760_p3, %p3754_p2 }
  0xad   : > { %3764 = shalt.err (!%p3761_p6)
}
  0xae   : > { %s3765_s28 = scalar_lea.vmem %s4834_s21, 16  ;;  %s4376_s29 = smov [#allocation13]  }
  0xaf   : > { %p3766_p4 = scmp.ne.s32.totalorder %s4834_s21, %s3765_s28  ;;  %s3770_s1 = sshll.u32 %s4376_s29, 4  ;;  %s3771_s1 = int_to_ptr.vmem [resolvable:$false] %s3770_s1 }
  0xb0   : > { %s3772_s4 = scalar_lea.vmem %s3771_s1, 32  ;;  %p3773_p5 = scmp.lt.s32.totalorder %s4834_s21, %s3771_s1 }
  0xb1   : > { %p3768_p11 = pnand %p3766_p4, %p4841_p0  ;;  %p3774_p12 = scmp.lt.s32.totalorder %s3772_s4, %s3765_s28 }
  0xb3   : > { %p3769_p1 = pneg %p3768_p11  ;;  %p3775_p8 = por %p3774_p12, %p3773_p5 }
  0xb5   : > { %p3776_p9 = pnand %p3775_p8, %p3769_p1 }
  0xb7   : > { %3779 = shalt.err (!%p3776_p9)
}
  0xb8   : > { %s5781_s5 = scalar_lea.sflag [#allocation14], %s4772_s27  ;;  %s5782_s29 = sld [smem:[#allocation73_spill]] }
  0xb9   : > { %3488 = dma.hbm_to_vmem [thread:$0]  (!%p5779_p13), %s4831_s26, 16, %s4834_s21, %s5781_s5  }
  0xba   : > { %s910_s28 = scalar_lea.vmem [#allocation16], %s4822_s7  ;;  %s5697_s4 = scalar_lea.sflag [#allocation17], %s4772_s27 }
  0xbb   : > { %s917_s1 = sshll.u32 %s910_s28, 4  ;;  %s918_s1 = int_to_ptr.vmem [resolvable:$true] %s917_s1 }
  0xbe   : > { %s5783_s22 = smov %s5782_s29  ;;  %s4870_s12 = scalar_lea.hbm %s5782_s29, %s4825_s30 }
  0xbf   : > { %s3780_s14 = scalar_lea.hbm %s4870_s12, 16  ;;  %s3785_s26 = scalar_lea.hbm %s5783_s22, 32 }
  0xc0   : > { %p3781_p5 = scmp.ne.s32.totalorder %s4870_s12, %s3780_s14  ;;  %p3786_p7 = scmp.lt.u32.totalorder %s4870_s12, %s5783_s22 }
  0xc1   : > { %p3787_p10 = scmp.lt.u32.totalorder %s3785_s26, %s3780_s14  ;;  %p3789_p6 = scmp.lt.u32.totalorder %s3780_s14, %s4870_s12 }
  0xc2   : > { %p3783_p12 = pnand %p3781_p5, %p4841_p0 }
  0xc3   : > { %p3788_p3 = por %p3787_p10, %p3786_p7 }
  0xc4   : > { %p3784_p2 = pneg %p3783_p12 }
  0xc5   : > { %p3790_p4 = por %p3789_p6, %p3788_p3 }
  0xc7   : > { %p3791_p11 = pnand %p3790_p4, %p3784_p2 }
  0xc9   : > { %3794 = shalt.err (!%p3791_p11)
}
  0xca   : > { %s3795_s2 = scalar_lea.vmem %s918_s1, 16  ;;  %s4377_s29 = smov [#allocation16]  }
  0xcb   : > { %p3796_p1 = scmp.ne.s32.totalorder %s918_s1, %s3795_s2  ;;  %s3800_s28 = sshll.u32 %s4377_s29, 4  ;;  %s3801_s28 = int_to_ptr.vmem [resolvable:$false] %s3800_s28 }
  0xcc   : > { %s3802_s6 = scalar_lea.vmem %s3801_s28, 32  ;;  %p3803_p5 = scmp.lt.s32.totalorder %s918_s1, %s3801_s28 }
  0xcd   : > { %p3798_p8 = pnand %p3796_p1, %p4841_p0  ;;  %p3804_p12 = scmp.lt.s32.totalorder %s3802_s6, %s3795_s2 }
  0xcf   : > { %p3799_p9 = pneg %p3798_p8  ;;  %p3805_p13 = por %p3804_p12, %p3803_p5 }
  0xd1   : > { %p3806_p7 = pnand %p3805_p13, %p3799_p9 }
  0xd3   : > { %3809 = shalt.err (!%p3806_p7)
}
  0xd4   : > { %p5784_p10 = scmp.ne.s32.totalorder %s5776_s9, 0  ;;  %s5785_s13 = sld [smem:[#allocation76_spill]] }
  0xd5   : > { %s952_s5 = scalar_lea.vmem [#allocation19], %s4822_s7  ;;  %s5698_s2 = scalar_lea.sflag [#allocation20], %s4772_s27 }
  0xd6   : > { %3494 = dma.hbm_to_vmem [thread:$0]  (!%p5784_p10), %s4870_s12, 16, %s918_s1, %s5697_s4  }
  0xd7   : > { %s959_s18 = sshll.u32 %s952_s5, 4  ;;  %s960_s18 = int_to_ptr.vmem [resolvable:$true] %s959_s18 }
  0xda   : > { %s4897_s26 = scalar_lea.hbm %s5785_s13, %s4825_s30  ;;  %s3815_s1 = scalar_lea.hbm %s5785_s13, 32 }
  0xdb   : > { %s3810_s29 = scalar_lea.hbm %s4897_s26, 16  ;;  %p3816_p6 = scmp.lt.u32.totalorder %s4897_s26, %s5785_s13 }
  0xdc   : > { %p3811_p13 = scmp.ne.s32.totalorder %s4897_s26, %s3810_s29  ;;  %p3817_p4 = scmp.lt.u32.totalorder %s3815_s1, %s3810_s29 }
  0xdd   : > { %p3819_p1 = scmp.lt.u32.totalorder %s3810_s29, %s4897_s26 }
  0xde   : > { %p3813_p2 = pnand %p3811_p13, %p4841_p0  ;;  %p3818_p11 = por %p3817_p4, %p3816_p6 }
  0xe0   : > { %p3814_p3 = pneg %p3813_p2  ;;  %p3820_p8 = por %p3819_p1, %p3818_p11 }
  0xe2   : > { %p3821_p9 = pnand %p3820_p8, %p3814_p3 }
  0xe4   : > { %3824 = shalt.err (!%p3821_p9)
}
  0xe5   : > { %s3825_s21 = scalar_lea.vmem %s960_s18, 16  ;;  %s4378_s5 = smov [#allocation19]  }
  0xe6   : > { %p3826_p5 = scmp.ne.s32.totalorder %s960_s18, %s3825_s21  ;;  %s3830_s4 = sshll.u32 %s4378_s5, 4  ;;  %s3831_s4 = int_to_ptr.vmem [resolvable:$false] %s3830_s4 }
  0xe7   : > { %s3832_s28 = scalar_lea.vmem %s3831_s4, 32  ;;  %p3833_p13 = scmp.lt.s32.totalorder %s960_s18, %s3831_s4 }
  0xe8   : > { %p3828_p12 = pnand %p3826_p5, %p4841_p0  ;;  %p3834_p2 = scmp.lt.s32.totalorder %s3832_s28, %s3825_s21 }
  0xea   : > { %p3829_p7 = pneg %p3828_p12  ;;  %p3835_p10 = por %p3834_p2, %p3833_p13 }
  0xec   : > { %p3836_p4 = pnand %p3835_p10, %p3829_p7 }
  0xee   : > { %3839 = shalt.err (!%p3836_p4)
}
  0xef   : > { %p5786_p6 = scmp.ne.s32.totalorder %s5776_s9, 0  ;;  %s5787_s16 = sld [smem:[#allocation79_spill]] }
  0xf0   : > { %s994_s4 = scalar_lea.vmem [#allocation22], %s4822_s7  ;;  %s4379_s14 = smov [#allocation12]  }
  0xf1   : > { %3500 = dma.hbm_to_vmem [thread:$0]  (!%p5786_p6), %s4897_s26, 16, %s960_s18, %s5698_s2  }
  0xf2   : > { %s1001_s6 = sshll.u32 %s994_s4, 4  ;;  %s4929_s21 = sshll.u32 %s4379_s14, 4  ;;  %s4927_s6 = int_to_ptr.vmem [resolvable:$true] %s1001_s6  ;;  %s782_s21 = int_to_ptr.vmem [resolvable:$true] %s4929_s21 }
  0xf3   : > { %s5702_s5 = scalar_lea.sflag [#allocation23], %s4772_s27 }
  0xf5   : > { %s4924_s1 = scalar_lea.hbm %s5787_s16, %s4825_s30  ;;  %s3845_s29 = scalar_lea.hbm %s5787_s16, 32 }
  0xf6   : > { %s3840_s28 = scalar_lea.hbm %s4924_s1, 16  ;;  %p3846_p1 = scmp.lt.u32.totalorder %s4924_s1, %s5787_s16 }
  0xf7   : > { %p3841_p10 = scmp.ne.s32.totalorder %s4924_s1, %s3840_s28  ;;  %p3847_p8 = scmp.lt.u32.totalorder %s3845_s29, %s3840_s28 }
  0xf8   : > { %p3849_p5 = scmp.lt.u32.totalorder %s3840_s28, %s4924_s1 }
  0xf9   : > { %p3843_p3 = pnand %p3841_p10, %p4841_p0  ;;  %p3848_p9 = por %p3847_p8, %p3846_p1 }
  0xfb   : > { %p3844_p11 = pneg %p3843_p3  ;;  %p3850_p12 = por %p3849_p5, %p3848_p9 }
  0xfd   : > { %p3851_p7 = pnand %p3850_p12, %p3844_p11 }
  0xff   : > { %3854 = shalt.err (!%p3851_p7)
}
 0x100   : > { %s3855_s4 = scalar_lea.vmem %s4927_s6, 16  ;;  %s4380_s14 = smov [#allocation22]  }
 0x101   : > { %p3856_p13 = scmp.ne.s32.totalorder %s4927_s6, %s3855_s4  ;;  %s3860_s26 = sshll.u32 %s4380_s14, 4  ;;  %s3861_s26 = int_to_ptr.vmem [resolvable:$false] %s3860_s26 }
 0x102   : > { %s3862_s2 = scalar_lea.vmem %s3861_s26, 32  ;;  %p3863_p10 = scmp.lt.s32.totalorder %s4927_s6, %s3861_s26 }
 0x103   : > { %p3858_p2 = pnand %p3856_p13, %p4841_p0  ;;  %p3864_p3 = scmp.lt.s32.totalorder %s3862_s2, %s3855_s4 }
 0x105   : > { %p3859_p4 = pneg %p3858_p2  ;;  %p3865_p1 = por %p3864_p3, %p3863_p10 }
 0x107   : > { %p3866_p8 = pnand %p3865_p1, %p3859_p4 }
 0x109   : > { %3869 = shalt.err (!%p3866_p8)
}
 0x10a   : > { %3506 = dma.hbm_to_vmem [thread:$0]  (!%p5786_p6), %s4924_s1, 16, %s4927_s6, %s5702_s5  }
 0x10b   : > { %s5788_s29 = sld [smem:[#allocation68_spill]]  ;;  %p5790_p9 = scmp.ne.s32.totalorder %s5751_s23, 0 }
 0x10d   : > { %p5791_p5 = pneg %p5790_p9 }
 0x111   : > { %s5789_s12 = smov %s5788_s29  ;;  %s3870_s14 = scalar_lea.hbm %s5788_s29, 16 }
 0x112   : > { %p3871_p11 = scmp.ne.s32.totalorder %s5789_s12, %s3870_s14  ;;  %p3877_p13 = scmp.lt.u32.totalorder %s3870_s14, %s5789_s12 }
 0x114   : > { %p3873_p12 = pnand %p3871_p11, %p5791_p5 }
 0x116   : > { %p3874_p7 = pneg %p3873_p12 }
 0x118   : > { %p3879_p2 = pnand %p3877_p13, %p3874_p7 }
 0x11a   : > { %3882 = shalt.err (!%p3879_p2)
}
 0x11b   : > { %s3883_s1 = scalar_lea.vmem %s782_s21, 16  ;;  %p5792_p10 = pmov %p5791_p5 }
 0x11c   : > { %p3884_p4 = scmp.ne.s32.totalorder %s782_s21, %s3883_s1  ;;  %s3890_s6 = scalar_lea.vmem %s782_s21, 32 }
 0x11d   : > { %p3891_p8 = scmp.lt.s32.totalorder %s782_s21, %s782_s21  ;;  %p3892_p6 = scmp.lt.s32.totalorder %s3890_s6, %s3883_s1 }
 0x11e   : > { %p3886_p3 = pnand %p3884_p4, %p5792_p10 }
 0x11f   : > { %p3893_p0 = por %p3892_p6, %p3891_p8 }
 0x120   : > { %p3887_p1 = pneg %p3886_p3 }
 0x122   : > { %p3894_p5 = pnand %p3893_p0, %p3887_p1 }
 0x124   : > { %3897 = shalt.err (!%p3894_p5)
}
 0x125   : > { %3475 = dma.hbm_to_vmem [thread:$0]  (!%p5790_p9), %s5789_s12, 16, %s782_s21, [#allocation11]  }
 0x126   : > { %s5793_s18 = sshll.u32 %s4368_s10, 7  ;;  %s5794_s26 = sld [smem:[#allocation64_spill]] }
 0x127   : > { %s5795_s2 = sshll.u32 %s4756_s19, 3  ;;  %s3153_s6 = sshll.u32 %s4368_s10, 4 }
 0x128   : > { %s808_s23 = scalar_lea.vmem [#allocation4], %s5795_s2  ;;  %s805_s13 = scalar_lea.sflag [#allocation5], %s4756_s19 }
 0x129   : > { %s815_s1 = sshll.u32 %s808_s23, 4  ;;  %p5796_p6 = scmp.ne.s32.totalorder %s5777_s8, 0  ;;  %s4985_s1 = int_to_ptr.vmem [resolvable:$true] %s815_s1 }
 0x12c   : > { %s4981_s4 = scalar_lea.hbm %s5794_s26, %s5793_s18  ;;  %s3903_s18 = scalar_lea.hbm %s5794_s26, 256 }
 0x12d   : > { %s3898_s28 = scalar_lea.hbm %s4981_s4, 128  ;;  %p3904_p12 = scmp.lt.u32.totalorder %s4981_s4, %s5794_s26 }
 0x12e   : > { %p3899_p0 = scmp.ne.s32.totalorder %s4981_s4, %s3898_s28  ;;  %p3905_p7 = scmp.lt.u32.totalorder %s3903_s18, %s3898_s28 }
 0x12f   : > { %p3907_p2 = scmp.lt.u32.totalorder %s3898_s28, %s4981_s4 }
 0x130   : > { %p3901_p11 = pnand %p3899_p0, %p5796_p6  ;;  %p3906_p13 = por %p3905_p7, %p3904_p12 }
 0x132   : > { %p3902_p9 = pneg %p3901_p11  ;;  %p3908_p4 = por %p3907_p2, %p3906_p13 }
 0x134   : > { %p3909_p10 = pnand %p3908_p4, %p3902_p9 }
 0x136   : > { %3912 = shalt.err (!%p3909_p10)
}
 0x137   : > { %s3913_s2 = scalar_lea.vmem %s4985_s1, 128  ;;  %s4381_s23 = smov [#allocation4]  }
 0x138   : > { %p3914_p3 = scmp.ne.s32.totalorder %s4985_s1, %s3913_s2  ;;  %s3918_s21 = sshll.u32 %s4381_s23, 4  ;;  %s3919_s21 = int_to_ptr.vmem [resolvable:$false] %s3918_s21 }
 0x139   : > { %s3920_s5 = scalar_lea.vmem %s3919_s21, 256  ;;  %p3921_p5 = scmp.lt.s32.totalorder %s4985_s1, %s3919_s21 }
 0x13a   : > { %p3916_p1 = pnand %p3914_p3, %p5796_p6  ;;  %p3922_p0 = scmp.lt.s32.totalorder %s3920_s5, %s3913_s2 }
 0x13c   : > { %p3917_p8 = pneg %p3916_p1  ;;  %p3923_p11 = por %p3922_p0, %p3921_p5 }
 0x13e   : > { %p3924_p12 = pnand %p3923_p11, %p3917_p8 }
 0x140   : > { %3927 = shalt.err (!%p3924_p12)
}
 0x141   : > { %p5797_p9 = scmp.ne.s32.totalorder %s5773_s24, 0  ;;  %s5798_s18 = sld [smem:[#allocation66_spill]] }
 0x142   : > { %s843_s2 = scalar_lea.vmem [#allocation9], %s4756_s19 }
 0x143   : > { %3479 = dma.hbm_to_vmem [thread:$0]  (!%p5797_p9), %s4981_s4, 128, %s4985_s1, %s805_s13  }
 0x144   : > { %s850_s23 = sshll.u32 %s843_s2, 4  ;;  %s851_s23 = int_to_ptr.vmem [resolvable:$true] %s850_s23 }
 0x147   : > { %s5015_s14 = scalar_lea.hbm %s5798_s18, %s3153_s6  ;;  %s3933_s1 = scalar_lea.hbm %s5798_s18, 32 }
 0x148   : > { %s3928_s21 = scalar_lea.hbm %s5015_s14, 16  ;;  %p3934_p4 = scmp.lt.u32.totalorder %s5015_s14, %s5798_s18 }
 0x149   : > { %p3929_p7 = scmp.ne.s32.totalorder %s5015_s14, %s3928_s21  ;;  %p3935_p10 = scmp.lt.u32.totalorder %s3933_s1, %s3928_s21 }
 0x14a   : > { %p3937_p1 = scmp.lt.u32.totalorder %s3928_s21, %s5015_s14 }
 0x14b   : > { %p3931_p13 = pnand %p3929_p7, %p5796_p6  ;;  %p3936_p3 = por %p3935_p10, %p3934_p4 }
 0x14d   : > { %p3932_p2 = pneg %p3931_p13  ;;  %p3938_p8 = por %p3937_p1, %p3936_p3 }
 0x14f   : > { %p3939_p5 = pnand %p3938_p8, %p3932_p2 }
 0x151   : > { %3942 = shalt.err (!%p3939_p5)
}
 0x152   : > { %s3943_s19 = scalar_lea.vmem %s851_s23, 16  ;;  %s4382_s6 = smov [#allocation9]  }
 0x153   : > { %p3944_p0 = scmp.ne.s32.totalorder %s851_s23, %s3943_s19  ;;  %s3948_s29 = sshll.u32 %s4382_s6, 4  ;;  %s3949_s29 = int_to_ptr.vmem [resolvable:$false] %s3948_s29 }
 0x154   : > { %s3950_s2 = scalar_lea.vmem %s3949_s29, 32  ;;  %p3951_p7 = scmp.lt.s32.totalorder %s851_s23, %s3949_s29 }
 0x155   : > { %p3946_p11 = pnand %p3944_p0, %p5796_p6  ;;  %p3952_p13 = scmp.lt.s32.totalorder %s3950_s2, %s3943_s19 }
 0x157   : > { %p3947_p12 = pneg %p3946_p11  ;;  %p3953_p9 = por %p3952_p13, %p3951_p7 }
 0x159   : > { %p3954_p4 = pnand %p3953_p9, %p3947_p12 }
 0x15b   : > { %3957 = shalt.err (!%p3954_p4)
}
 0x15c   : > { %p5799_p10 = scmp.ne.s32.totalorder %s5773_s24, 0  ;;  %s5800_s21 = scalar_lea.sflag [#allocation8], %s4772_s27 }
 0x15d   : > { %s5801_s4 = sld [smem:[#allocation72_spill]]  ;;  %s893_s28 = scalar_lea.vmem [#allocation15], %s4822_s7 }
 0x15e   : > { %3485 = dma.hbm_to_vmem [thread:$0]  (!%p5799_p10), %s5015_s14, 16, %s851_s23, %s5800_s21  }
 0x15f   : > { %s900_s19 = sshll.u32 %s893_s28, 4  ;;  %p5803_p9 = scmp.ne.s32.totalorder %s5780_s20, 0  ;;  %s901_s19 = int_to_ptr.vmem [resolvable:$true] %s900_s19 }
 0x163   : > { %s5802_s1 = smov %s5801_s4  ;;  %s5041_s13 = scalar_lea.hbm %s5801_s4, %s4825_s30 }
 0x164   : > { %s3958_s24 = scalar_lea.hbm %s5041_s13, 16  ;;  %s3963_s14 = scalar_lea.hbm %s5802_s1, 32 }
 0x165   : > { %p3959_p6 = scmp.ne.s32.totalorder %s5041_s13, %s3958_s24  ;;  %p3964_p1 = scmp.lt.u32.totalorder %s5041_s13, %s5802_s1 }
 0x166   : > { %p3965_p8 = scmp.lt.u32.totalorder %s3963_s14, %s3958_s24  ;;  %p3967_p0 = scmp.lt.u32.totalorder %s3958_s24, %s5041_s13 }
 0x167   : > { %p3961_p2 = pnand %p3959_p6, %p5803_p9 }
 0x168   : > { %p3966_p5 = por %p3965_p8, %p3964_p1 }
 0x169   : > { %p3962_p3 = pneg %p3961_p2 }
 0x16a   : > { %p3968_p11 = por %p3967_p0, %p3966_p5 }
 0x16c   : > { %p3969_p12 = pnand %p3968_p11, %p3962_p3 }
 0x16e   : > { %3972 = shalt.err (!%p3969_p12)
}
 0x16f   : > { %s3973_s21 = scalar_lea.vmem %s901_s19, 16  ;;  %s4383_s8 = smov [#allocation15]  }
 0x170   : > { %p3974_p7 = scmp.ne.s32.totalorder %s901_s19, %s3973_s21  ;;  %s3978_s5 = sshll.u32 %s4383_s8, 4  ;;  %s3979_s5 = int_to_ptr.vmem [resolvable:$false] %s3978_s5 }
 0x171   : > { %s3980_s4 = scalar_lea.vmem %s3979_s5, 32  ;;  %p3981_p10 = scmp.lt.s32.totalorder %s901_s19, %s3979_s5 }
 0x172   : > { %p3976_p13 = pnand %p3974_p7, %p5803_p9  ;;  %p3982_p6 = scmp.lt.s32.totalorder %s3980_s4, %s3973_s21 }
 0x174   : > { %p3977_p4 = pneg %p3976_p13  ;;  %p3983_p2 = por %p3982_p6, %p3981_p10 }
 0x176   : > { %p3984_p1 = pnand %p3983_p2, %p3977_p4 }
 0x178   : > { %3987 = shalt.err (!%p3984_p1)
}
 0x179   : > { %p5804_p8 = scmp.ne.s32.totalorder %s5776_s9, 0  ;;  %s5805_s28 = scalar_lea.sflag [#allocation14], %s4772_s27 }
 0x17a   : > { %s5806_s11 = sld [smem:[#allocation74_spill]]  ;;  %s927_s14 = scalar_lea.vmem [#allocation18], %s4822_s7 }
 0x17b   : > { %3491 = dma.hbm_to_vmem [thread:$0]  (!%p5804_p8), %s5041_s13, 16, %s901_s19, %s5805_s28  }
 0x17c   : > { %s934_s23 = sshll.u32 %s927_s14, 4  ;;  %s935_s23 = int_to_ptr.vmem [resolvable:$true] %s934_s23 }
 0x180   : > { %s5067_s29 = scalar_lea.hbm %s5806_s11, %s4825_s30  ;;  %s3993_s13 = scalar_lea.hbm %s5806_s11, 32 }
 0x181   : > { %s3988_s2 = scalar_lea.hbm %s5067_s29, 16  ;;  %p3994_p11 = scmp.lt.u32.totalorder %s5067_s29, %s5806_s11 }
 0x182   : > { %p3989_p3 = scmp.ne.s32.totalorder %s5067_s29, %s3988_s2  ;;  %p3995_p12 = scmp.lt.u32.totalorder %s3993_s13, %s3988_s2 }
 0x183   : > { %p3997_p13 = scmp.lt.u32.totalorder %s3988_s2, %s5067_s29 }
 0x184   : > { %p3991_p5 = pnand %p3989_p3, %p5803_p9  ;;  %p3996_p7 = por %p3995_p12, %p3994_p11 }
 0x186   : > { %p3992_p0 = pneg %p3991_p5  ;;  %p3998_p4 = por %p3997_p13, %p3996_p7 }
 0x188   : > { %p3999_p10 = pnand %p3998_p4, %p3992_p0 }
 0x18a   : > { %4002 = shalt.err (!%p3999_p10)
}
 0x18b   : > { %s4003_s4 = scalar_lea.vmem %s935_s23, 16  ;;  %s4384_s28 = smov [#allocation18]  }
 0x18c   : > { %p4004_p6 = scmp.ne.s32.totalorder %s935_s23, %s4003_s4  ;;  %s4008_s24 = sshll.u32 %s4384_s28, 4  ;;  %s4009_s24 = int_to_ptr.vmem [resolvable:$false] %s4008_s24 }
 0x18d   : > { %s4010_s6 = scalar_lea.vmem %s4009_s24, 32  ;;  %p4011_p3 = scmp.lt.s32.totalorder %s935_s23, %s4009_s24 }
 0x18e   : > { %p4006_p2 = pnand %p4004_p6, %p5803_p9  ;;  %p4012_p5 = scmp.lt.s32.totalorder %s4010_s6, %s4003_s4 }
 0x190   : > { %p4007_p1 = pneg %p4006_p2  ;;  %p4013_p8 = por %p4012_p5, %p4011_p3 }
 0x192   : > { %p4014_p11 = pnand %p4013_p8, %p4007_p1 }
 0x194   : > { %4017 = shalt.err (!%p4014_p11)
}
 0x195   : > { %p5807_p12 = scmp.ne.s32.totalorder %s5776_s9, 0  ;;  %s5808_s14 = scalar_lea.sflag [#allocation17], %s4772_s27 }
 0x196   : > { %s5809_s15 = sld [smem:[#allocation78_spill]]  ;;  %s977_s13 = scalar_lea.vmem [#allocation21], %s4822_s7 }
 0x197   : > { %3497 = dma.hbm_to_vmem [thread:$0]  (!%p5807_p12), %s5067_s29, 16, %s935_s23, %s5808_s14  }
 0x198   : > { %s984_s19 = sshll.u32 %s977_s13, 4  ;;  %s985_s19 = int_to_ptr.vmem [resolvable:$true] %s984_s19 }
 0x19c   : > { %s5093_s8 = scalar_lea.hbm %s5809_s15, %s4825_s30  ;;  %s4023_s29 = scalar_lea.hbm %s5809_s15, 32 }
 0x19d   : > { %s4018_s5 = scalar_lea.hbm %s5093_s8, 16  ;;  %p4024_p13 = scmp.lt.u32.totalorder %s5093_s8, %s5809_s15 }
 0x19e   : > { %p4019_p8 = scmp.ne.s32.totalorder %s5093_s8, %s4018_s5  ;;  %p4025_p4 = scmp.lt.u32.totalorder %s4023_s29, %s4018_s5 }
 0x19f   : > { %p4027_p6 = scmp.lt.u32.totalorder %s4018_s5, %s5093_s8 }
 0x1a0   : > { %p4021_p0 = pnand %p4019_p8, %p5803_p9  ;;  %p4026_p10 = por %p4025_p4, %p4024_p13 }
 0x1a2   : > { %p4022_p7 = pneg %p4021_p0  ;;  %p4028_p2 = por %p4027_p6, %p4026_p10 }
 0x1a4   : > { %p4029_p1 = pnand %p4028_p2, %p4022_p7 }
 0x1a6   : > { %4032 = shalt.err (!%p4029_p1)
}
 0x1a7   : > { %s4033_s6 = scalar_lea.vmem %s985_s19, 16  ;;  %s4385_s14 = smov [#allocation21]  }
 0x1a8   : > { %p4034_p3 = scmp.ne.s32.totalorder %s985_s19, %s4033_s6  ;;  %s4038_s2 = sshll.u32 %s4385_s14, 4  ;;  %s4039_s2 = int_to_ptr.vmem [resolvable:$false] %s4038_s2 }
 0x1a9   : > { %s4040_s21 = scalar_lea.vmem %s4039_s2, 32  ;;  %p4041_p8 = scmp.lt.s32.totalorder %s985_s19, %s4039_s2 }
 0x1aa   : > { %p4036_p5 = pnand %p4034_p3, %p5803_p9  ;;  %p4042_p0 = scmp.lt.s32.totalorder %s4040_s21, %s4033_s6 }
 0x1ac   : > { %p4037_p11 = pneg %p4036_p5  ;;  %p4043_p12 = por %p4042_p0, %p4041_p8 }
 0x1ae   : > { %p4044_p4 = pnand %p4043_p12, %p4037_p11 }
 0x1b0   : > { %4047 = shalt.err (!%p4044_p4)
}
 0x1b1   : > { %p5810_p13 = scmp.ne.s32.totalorder %s5776_s9, 0  ;;  %s5811_s13 = scalar_lea.sflag [#allocation20], %s4772_s27 }
 0x1b2   : > { %s5812_s17 = sld [smem:[#allocation80_spill]]  ;;  %s1011_s29 = scalar_lea.vmem [#allocation24], %s4822_s7 }
 0x1b3   : > { %3503 = dma.hbm_to_vmem [thread:$0]  (!%p5810_p13), %s5093_s8, 16, %s985_s19, %s5811_s13  }
 0x1b4   : > { %s1018_s23 = sshll.u32 %s1011_s29, 4  ;;  %s1019_s23 = int_to_ptr.vmem [resolvable:$true] %s1018_s23 }
 0x1b8   : > { %s5119_s28 = scalar_lea.hbm %s5812_s17, %s4825_s30  ;;  %s4053_s8 = scalar_lea.hbm %s5812_s17, 32 }
 0x1b9   : > { %s4048_s24 = scalar_lea.hbm %s5119_s28, 16  ;;  %p4054_p6 = scmp.lt.u32.totalorder %s5119_s28, %s5812_s17 }
 0x1ba   : > { %p4049_p12 = scmp.ne.s32.totalorder %s5119_s28, %s4048_s24  ;;  %p4055_p2 = scmp.lt.u32.totalorder %s4053_s8, %s4048_s24 }
 0x1bb   : > { %p4057_p3 = scmp.lt.u32.totalorder %s4048_s24, %s5119_s28 }
 0x1bc   : > { %p4051_p7 = pnand %p4049_p12, %p5803_p9  ;;  %p4056_p1 = por %p4055_p2, %p4054_p6 }
 0x1be   : > { %p4052_p10 = pneg %p4051_p7  ;;  %p4058_p5 = por %p4057_p3, %p4056_p1 }
 0x1c0   : > { %p4059_p11 = pnand %p4058_p5, %p4052_p10 }
 0x1c2   : > { %4062 = shalt.err (!%p4059_p11)
}
 0x1c3   : > { %s4063_s7 = scalar_lea.vmem %s1019_s23, 16  ;;  %s4386_s30 = smov [#allocation24]  }
 0x1c4   : > { %p4064_p8 = scmp.ne.s32.totalorder %s1019_s23, %s4063_s7  ;;  %s4068_s21 = sshll.u32 %s4386_s30, 4  ;;  %s4069_s21 = int_to_ptr.vmem [resolvable:$false] %s4068_s21 }
 0x1c5   : > { %s4070_s13 = scalar_lea.vmem %s4069_s21, 32  ;;  %p4071_p12 = scmp.lt.s32.totalorder %s1019_s23, %s4069_s21 }
 0x1c6   : > { %p4066_p0 = pnand %p4064_p8, %p5803_p9  ;;  %p4072_p7 = scmp.lt.s32.totalorder %s4070_s13, %s4063_s7 }
 0x1c8   : > { %p4067_p4 = pneg %p4066_p0  ;;  %p4073_p13 = por %p4072_p7, %p4071_p12 }
 0x1ca   : > { %p4074_p2 = pnand %p4073_p13, %p4067_p4 }
 0x1cc   : > { %4077 = shalt.err (!%p4074_p2)
}
 0x1cd   : > { %p5813_p6 = scmp.ne.s32.totalorder %s5776_s9, 0  ;;  %s5814_s5 = scalar_lea.sflag [#allocation23], %s4772_s27 }
 0x1ce   : > { %p5815_p10 = scmp.ne.s32.totalorder %s5750_s25, 0 }
 0x1cf   : > { %3509 = dma.hbm_to_vmem [thread:$0]  (!%p5813_p6), %s5119_s28, 16, %s1019_s23, %s5814_s5  }
 0x1d0   : > { %1027 = sbr.rel (%p5815_p10) target bundleno = 3958 (0xf76), region = 108  ;;  %s5816_s20 = sld [smem:[#allocation56_spill]] (!%p5815_p10) }
 0x1d1   : > { %s5144_s4 = sand.u32 (!%p5815_p10), 1, %s4348_s0  }
 0x1d2   : > { %s5147_s29 = sshll.u32 (!%p5815_p10), %s5144_s4, 3  ;;  %s1030_s24 = scalar_lea.sflag (!%p5815_p10), [#allocation5], %s5144_s4 }
 0x1d6   : > { %p5817_p9 = scmp.ne.s32.totalorder (!%p5815_p10), %s5816_s20, 0 }
 0x1d8   : > { %4275 = dma.done.wait (%p5817_p9), %s1030_s24, 128  }
 0x1d9   : > { %4277 = vsyncadd (%p5817_p9), %s1030_s24, 4294967168  ;;  %s5818_s9 = sld [smem:[#allocation52_spill]] }
 0x1df   : > { %s5156_s25 = sand.u32 1, %s5818_s9  }
 0x1e0   : > { %s1039_s27 = scalar_lea.sflag [#allocation8], %s5156_s25 }
 0x1e1   : > { %4279 = dma.done.wait (%p5817_p9), %s1039_s27, 144  }
 0x1e2   : > { %4281 = vsyncadd (%p5817_p9), %s1039_s27, 4294967152  ;;  %p5819_p13 = scmp.eq.s32.totalorder %s5818_s9, 0 }
 0x1e4   : > { %4283 = dma.done.wait (%p5819_p13), [#allocation11], 32   ;;  %p5820_p1 = pmov %p5819_p13 }
 0x1e5   : > { %s5821_s23 = sld [smem:[#allocation44_spill]]  ;;  %s5822_s14 = sld [smem:[#allocation53_spill]] }
 0x1e6   : > { %4285 = vsyncadd (%p5820_p1), [#allocation11], 4294967264  ;;  %s1064_s19 = scalar_lea.sflag [#allocation14], %s5156_s25 }
 0x1eb   : > { %s5169_s8 = sand.u32 1, %s5821_s23   ;;  %p5823_p3 = scmp.ne.s32.totalorder %s5822_s14, 0 }
 0x1ed   : > { %4287 = dma.done.wait (%p5823_p3), %s1064_s19, 32  }
 0x1ee   : > { %4289 = vsyncadd (%p5823_p3), %s1064_s19, 4294967264  ;;  %s1080_s30 = scalar_lea.sflag [#allocation17], %s5156_s25 }
 0x1ef   : > { %4291 = dma.done.wait (%p5823_p3), %s1080_s30, 32  }
 0x1f0   : > { %4293 = vsyncadd (%p5823_p3), %s1080_s30, 4294967264  ;;  %s1096_s5 = scalar_lea.sflag [#allocation20], %s5156_s25 }
 0x1f1   : > { %4295 = dma.done.wait (%p5823_p3), %s1096_s5, 32  }
 0x1f2   : > { %4297 = vsyncadd (%p5823_p3), %s1096_s5, 4294967264  ;;  %s1112_s9 = scalar_lea.sflag [#allocation23], %s5156_s25 }
 0x1f3   : > { %4299 = dma.done.wait (%p5823_p3), %s1112_s9, 32  }
 0x1f4   : > { %4301 = vsyncadd (%p5823_p3), %s1112_s9, 4294967264  ;;  %s5824_s23 = sld [smem:[#allocation48_spill]]  ;;  %s1248_s19 = sand.u32 1, %s4324_s3  }
 0x1f5   : > { %s5199_s30 = sshll.u32 %s1248_s19, 3  ;;  %s5825_s14 = sld [smem:[#allocation69_spill]] }
 0x1f6   : > { %s5826_s28 = sld [smem:[#allocation71_spill]]  ;;  %s5827_s11 = sld [smem:[#allocation75_spill]] }
 0x1f7   : > { %s5828_s16 = sld [smem:[#allocation77_spill]]  ;;  %s1243_s18 = scalar_lea.vmem [#allocation25], %s5147_s29 }
 0x1f8   : > { %s1250_s13 = scalar_lea.vmem [#allocation26], %s5199_s30  ;;  %s1257_s20 = scalar_lea.vmem [#allocation28], %s5147_s29 }
 0x1f9   : > { %s5707_s22 = scalar_lea.vmem [#allocation31], %s5144_s4 }
 0x1fa   : > { %p1270_p5 = scmp.lt.s32.totalorder %s5824_s23, 1  ;;  %p3177_p11 = scmp.ne.s32.totalorder %s5824_s23, 0 }
 0x1fb   : > { %vm1299_vm0 = vcmask (!%p3177_p11), 261120   ;;  %v3178_v11 = vld [vmem:[#allocation10] ss:$0 sm:$0xff] (!%p3177_p11)  ;;  %v3179_v13 = vld [vmem:[#allocation12] ss:$0 sm:$0xff] (!%p3177_p11) }
 0x1fc   : > { %s1271_s5 = scalar_select %p1270_p5, %s5824_s23, 1 }
 0x1fd   : > { %1295 = sbr.rel (%p3177_p11) target bundleno = 830 (0x33e), region = 164 }
 0x1fe   : > { %s3219_s27 = sshll.u32 %s1271_s5, 5  ;;  %s3222_s24 = sshll.u32 %s1271_s5, 6 }
 0x1ff   : > { %s5206_s9 = scalar_lea.vmem %s5825_s14, %s3219_s27  ;;  %s5211_s2 = scalar_lea.vmem %s5826_s28, %s3219_s27 }
 0x200   : > { %s5216_s19 = scalar_lea.vmem %s5827_s11, %s3219_s27  ;;  %s5221_s17 = scalar_lea.vmem %s5828_s16, %s3222_s24 }
 0x201   : > { %s1122_s5 = scalar_lea.vmem [#allocation24], %s5169_s8  ;;  %s1263_s14 = scalar_lea.vmem [#allocation29], %s5144_s4 }
 0x202   : > { %s5829_s28 = scalar_lea.vmem (!%p3177_p11), [#allocation4], %s5147_s29 }
 0x203   : > { %v1296_v0 = vld [vmem:[%s5829_s28] sm:$0xff] (!%p3177_p11) }
 0x204   : > { %v1300_v1 = vsel %vm1299_vm0, %v1296_v0, 0.0 }
 0x205   : > { %1301 = vadd.xlane.f32.xlu0 %v1300_v1 }
 0x292   : > { %v1302_v2 = vpop.xlane.xlu0 %1301 }
 0x293   : > { %v1304_v3 = vmul.f32 0.03125, %v1302_v2 }
 0x295   : > { %v1305_v4 = vsub.f32 %v1296_v0, %v1304_v3 }
 0x297   : > { %v1306_v5 = vmul.f32 %v1305_v4, %v1305_v4 }
 0x299   : > { %v1307_v6 = vsel %vm1299_vm0, %v1306_v5, 0.0 }
 0x29a   : > { %1308 = vadd.xlane.f32.xlu0 %v1307_v6 }
 0x327   : > { %v1309_v7 = vpop.xlane.xlu0 %1308 }
 0x328   : > { %v1310_v8 = vmul.f32 0.03125, %v1309_v7 }
 0x32a   : > { %v1311_v9 = vadd.f32 1e-12, %v1310_v8 }
 0x32c   : > { %3666 = vrsqrt.f32 %v1311_v9 }
 0x336   : > { %v3667_v10 = vpop.eup %3666 }
 0x337   : > { %v1313_v12 = vmul.f32 %v3667_v10, %v1305_v4 }
 0x339   : > { %v1320_v14 = vmul.f32 %v3178_v11, %v1313_v12 }
 0x33b   : > { %v1327_v15 = vadd.f32 %v3179_v13, %v1320_v14 }
 0x33d   : > { %1328 = vst.msk [vmem:[%s1243_s18] sm:$0xff] %vm1299_vm0, %v1327_v15  ;;  %1329 = vst.msk [vmem:[#allocation2] sm:$0xff] %vm1299_vm0, %v1327_v15 }
 0x33e PF: > { %v1333_v16 = vld [vmem:[%s5206_s9] sm:$0xff]  ;;  %v1334_v17 = vld [vmem:[%s5206_s9 + $0x8] sm:$0xff]  ;;  %v1335_v18 = vld [vmem:[%s5206_s9 + $0x10] sm:$0xff]  ;;  %v4387_v19 = vmov 0.0|0.0   ;;  %vm4388_vm1 = vmmov 0   ;;  %v4389_v22 = vmov 0.0  }
 0x33f   : > { %3387 = vmatprep.subr.bf16.mxu1 %v4387_v19  ;;  %v3388_v20 = vpack.c.bf16 %v1334_v17, %v1333_v16  ;;  %v1336_v21 = vld [vmem:[%s5206_s9 + $0x18] sm:$0xff]  ;;  %3281 = vmatprep.mubr.msk.f32.mxu1 %vm4388_vm1, %v4389_v22  ;;  %vm1331_vm2 = vcmask 261120   ;;  %s5830_s11 = scalar_lea.vmem [#allocation13], %s5169_s8  ;;  %s4390_s15 = smov 120   ;;  %vm1421_vm3 = vcmask 64512   ;;  %vm2105_vm4 = vcmask 130048  }
 0x340   : > { %3294 = vmatprep.subr.mxu0 %v4389_v22  ;;  %3296 = vmatprep.mubr.msk.f32.mxu0 %vm4388_vm1, %v4389_v22  ;;  %v3391_v24 = vpack.c.bf16 %v1336_v21, %v1335_v18  ;;  %v3180_v25 = vld [vmem:[%s5830_s11] ss:$0 sm:$0xff]  ;;  %s4391_s16 = smov 96   ;;  %s4392_s12 = smov 80   ;;  %vm2107_vm5 = vcmask 195584   ;;  %vm2332_vm6 = vcmask 523264  }
 0x341   : > { %3389 = vmatpush3.bf16.msra.mxu1 %v3388_v20  ;;  %s4393_s1 = smov 88   ;;  %s4394_s6 = smov 72  }
 0x342   : > { %3390 = vmatprep.subr.bf16.mxu1 %v4387_v19  ;;  %s4395_s7 = smov 112   ;;  %s4396_s21 = smov 104  }
 0x343   : > { %s5831_s24 = scalar_lea.vmem [#allocation9], %s5144_s4  ;;  %s4397_s27 = smov 56  }
 0x344   : > { %v5245_v23 = vld [vmem:[#allocation2] sm:$0xff]  ;;  %s4398_s23 = smov 64   ;;  %s4399_s9 = smov 48  }
 0x345   : > { %1332 = vst.msk [vmem:[%s1250_s13] sm:$0xff] %vm1331_vm2, %v5245_v23  ;;  %3392 = vmatpush3.bf16.msra.mxu1 %v3391_v24  ;;  %v3184_v37 = vld [vmem:[%s5831_s24] ss:$0 sm:$0xff]  ;;  %s4400_s28 = smov 40   ;;  %s4401_s11 = smov 8  }
 0x346   : > { %3284 = vmatprep.subr.mxu1 %v4389_v22 }
 0x348   : > { %3282 = vmatmul.mubr.msk.f32.vlgmr.msra.gmra.mrb[0].mxu1 %vm1331_vm2, %v5245_v23 }
 0x349   : > { %3286 = vmatprep.mubr.msk.f32.mxu1 %vm4388_vm1, %v4389_v22 }
 0x41b   : > { %v1413_v26 = vpop.f32.mrb[0].mxu1 }
 0x41c   : > { %v5262_v27 = vadd.f32 %v3180_v25, %v1413_v26  ;;  %v3283_v28 = vpop.f32.mrb[1].mxu1 }
 0x41e   : > { %1591 = vrot.lane.b32.xlu1 %v5262_v27, %s4390_s15  ;;  %1419 = vrot.lane.b32.xlu0 %v5262_v27, %s4391_s16  ;;  %s4402_s15 = smov 16   ;;  %s4403_s16 = smov 24  }
 0x422   : > { %1760 = vrot.lane.b32.xlu1 %v5262_v27, %s4392_s12  ;;  %1593 = vrot.lane.b32.xlu0 %v5262_v27, %s4393_s1  ;;  %s5833_s12 = scalar_lea.vmem [#allocation16], %s5169_s8  ;;  %s5834_s1 = scalar_lea.vmem [#allocation18], %s5169_s8 }
 0x426   : > { %1927 = vrot.lane.b32.xlu1 %v5262_v27, %s4394_s6  ;;  %1758 = vrot.lane.b32.xlu0 %v5262_v27, %s4395_s7  ;;  %s5837_s6 = scalar_lea.vmem [#allocation22], %s5169_s8  ;;  %s5838_s7 = sld [smem:[#allocation48_spill]] }
 0x42a   : > { %1925 = vrot.lane.b32.xlu0 %v5262_v27, %s4396_s21 }
 0x42c   : > { %p3205_p8 = scmp.ne.s32.totalorder %s5838_s7, 1 }
 0x42d   : > { %vm4405_vm7 = vmmov (!%p3205_p8), 0   ;;  %vm2521_vm8 = vcmask (!%p3205_p8), 253952   ;;  %vm2601_vm9 = vcmask (!%p3205_p8), 16384  }
 0x490   : > { %v1592_v29 = vpop.permute.xlu1 %1591  ;;  %v1420_v30 = vpop.permute.xlu0 %1419 }
 0x491   : > { %3285 = vmatpush3.xpose.msk.msra.mxu1 %vm1421_vm3, %v1420_v30 }
 0x492   : > { %3289 = vmatprep.subr.mxu1 %v4389_v22 }
 0x494   : > { %3287 = vmatmul.mubr.msk.f32.vlgmr.msra.gmra.mrb[2].mxu1 %vm1421_vm3, %v5262_v27  ;;  %v1594_v31 = vpop.permute.xlu0 %1593  ;;  %v1761_v32 = vpop.permute.xlu1 %1760 }
 0x495   : > { %3295 = vmatpush3.xpose.msk.msra.mxu0 %vm1421_vm3, %v1594_v31  ;;  %3291 = vmatprep.mubr.msk.f32.mxu1 %vm4388_vm1, %v4389_v22 }
 0x496   : > { %3304 = vmatprep.subr.mxu0 %v4389_v22 }
 0x498   : > { %3297 = vmatmul.mubr.msk.f32.vlgmr.msra.gmra.mrb[0].mxu0 %vm1421_vm3, %v1592_v29  ;;  %v1759_v33 = vpop.permute.xlu0 %1758  ;;  %v1928_v34 = vpop.permute.xlu1 %1927 }
 0x499   : > { %3305 = vmatpush3.xpose.msk.msra.mxu0 %vm1421_vm3, %v1761_v32  ;;  %3306 = vmatprep.mubr.msk.f32.mxu0 %vm4388_vm1, %v4389_v22  ;;  %v2109_v32 = vld [vmem:[%s5211_s2] sm:$0xff] }
 0x49a   : > { %3314 = vmatprep.subr.mxu0 %v4389_v22 }
 0x49c   : > { %3307 = vmatmul.mubr.msk.f32.vlgmr.msra.gmra.mrb[2].mxu0 %vm1421_vm3, %v1759_v33  ;;  %v1926_v35 = vpop.permute.xlu0 %1925  ;;  %v2110_v33 = vld [vmem:[%s5211_s2 + $0x8] sm:$0xff] }
 0x49d   : > { %3315 = vmatpush3.xpose.msk.msra.mxu0 %vm1421_vm3, %v1928_v34  ;;  %3316 = vmatprep.mubr.msk.f32.mxu0 %vm4388_vm1, %v4389_v22  ;;  %v3394_v34 = vpack.c.bf16 %v2110_v33, %v2109_v32 }
 0x49e   : > { %3393 = vmatprep.subr.bf16.mxu0 %v4387_v19 }
 0x4a0   : > { %3317 = vmatmul.mubr.msk.f32.vlgmr.msra.gmra.mrb[4].mxu0 %vm1421_vm3, %v1926_v35 }
 0x4a1   : > { %3332 = vmatprep.mubr.msk.f32.mxu0 %vm4388_vm1, %v4389_v22  ;;  %3395 = vmatpush3.bf16.msra.mxu0 %v3394_v34 }
 0x4a2   : > { %3396 = vmatprep.subr.bf16.mxu0 %v4387_v19 }
 0x567   : > { %v1492_v36 = vpop.f32.mrb[2].mxu1 }
 0x568   : > { %v1496_v38 = vmul.f32 0.35355338, %v1492_v36  ;;  %v3288_v39 = vpop.f32.mrb[3].mxu1 }
 0x569   : > { %v2111_v39 = vld [vmem:[%s5211_s2 + $0x10] sm:$0xff] }
 0x56a   : > { %v1503_v40 = vadd.f32 %v3184_v37, %v1496_v38 }
 0x56b   : > { %v1665_v41 = vpop.f32.mrb[0].mxu0 }
 0x56c   : > { %v1669_v42 = vmul.f32 0.35355338, %v1665_v41  ;;  %v3298_v43 = vpop.f32.mrb[1].mxu0  ;;  %v1504_v44 = vsel %vm1421_vm3, %v1503_v40, -inf }
 0x56d   : > { %1505 = vmax.xlane.f32.xlu1 %v1504_v44 }
 0x56e   : > { %v1670_v45 = vadd.f32 %v3184_v37, %v1669_v42 }
 0x56f   : > { %v1832_v46 = vpop.f32.mrb[2].mxu0 }
 0x570   : > { %v1836_v47 = vmul.f32 0.35355338, %v1832_v46  ;;  %v3308_v48 = vpop.f32.mrb[3].mxu0  ;;  %v1671_v49 = vsel %vm1421_vm3, %v1670_v45, -inf }
 0x571   : > { %1672 = vmax.xlane.f32.xlu0 %v1671_v49 }
 0x572   : > { %v1837_v50 = vadd.f32 %v3184_v37, %v1836_v47 }
 0x573   : > { %v1999_v51 = vpop.f32.mrb[4].mxu0 }
 0x574   : > { %v2003_v52 = vmul.f32 0.35355338, %v1999_v51  ;;  %v3318_v53 = vpop.f32.mrb[5].mxu0  ;;  %v1838_v54 = vsel %vm1421_vm3, %v1837_v50, -inf }
 0x575   : > { %1839 = vmax.xlane.f32.xlu0 %v1838_v54 }
 0x576   : > { %v2004_v55 = vadd.f32 %v3184_v37, %v2003_v52 }
 0x578   : > { %v2005_v56 = vsel %vm1421_vm3, %v2004_v55, -inf }
 0x579   : > { %2006 = vmax.xlane.f32.xlu1 %v2005_v56 }
 0x58a   : > { %1682 = vrot.lane.b32.xlu1 %v5262_v27, %s4397_s27  ;;  %s5839_s27 = sld [smem:[#allocation81_spill]] (!%p3205_p8) }
 0x5fa   : > { %v1506_v57 = vpop.xlane.xlu1 %1505 }
 0x5fb   : > { %v1507_v58 = vsub.f32 %v1503_v40, %v1506_v57  ;;  %v2112_v40 = vld [vmem:[%s5211_s2 + $0x18] sm:$0xff]  ;;  %s5832_s2 = scalar_lea.vmem [#allocation15], %s5169_s8 }
 0x5fc   : > { %v3397_v41 = vpack.c.bf16 %v2112_v40, %v2111_v39  ;;  %v3195_v52 = vld [vmem:[%s5832_s2] ss:$0 sm:$0xff] }
 0x5fd   : > { %v1508_v59 = vmul.f32 1.442695, %v1507_v58 }
 0x5fe   : > { %v1673_v60 = vpop.xlane.xlu0 %1672  ;;  %3398 = vmatpush3.bf16.msra.mxu0 %v3397_v41 }
 0x5ff   : > { %3668 = vpow2.f32 %v1508_v59  ;;  %v1674_v61 = vsub.f32 %v1670_v45, %v1673_v60  ;;  %3405 = vmatprep.subr.bf16.mxu0 %v4387_v19 }
 0x601   : > { %v1675_v62 = vmul.f32 1.442695, %v1674_v61 }
 0x602   : > { %v1840_v8 = vpop.xlane.xlu0 %1839 }
 0x603   : > { %3670 = vpow2.f32 %v1675_v62  ;;  %v1841_v9 = vsub.f32 %v1837_v50, %v1840_v8 }
 0x605   : > { %v1842_v10 = vmul.f32 1.442695, %v1841_v9  ;;  %v3198_v9 = vld [vmem:[%s5834_s1] ss:$0 sm:$0xff] }
 0x606   : > { %v2007_v63 = vpop.xlane.xlu1 %2006 }
 0x607   : > { %v2008_v0 = vsub.f32 %v2004_v55, %v2007_v63  ;;  %v2225_v63 = vld [vmem:[%s5216_s19 + $0x8] sm:$0xff] }
 0x609   : > { %v3669_v1 = vpop.eup %3668  ;;  %v2009_v2 = vmul.f32 1.442695, %v2008_v0 }
 0x60a   : > { %v1510_v3 = vsel %vm1421_vm3, %v3669_v1, 0.0  ;;  %v1683_v13 = vpop.permute.xlu1 %1682 }
 0x60b   : > { %3672 = vpow2.f32 %v2009_v2  ;;  %1511 = vadd.xlane.f32.xlu0 %v1510_v3 }
 0x60c   : > { %3674 = vpow2.f32 %v1842_v10 }
 0x60d   : > { %v3671_v4 = vpop.eup %3670 }
 0x60e   : > { %v1677_v5 = vsel %vm1421_vm3, %v3671_v4, 0.0 }
 0x60f   : > { %1678 = vadd.xlane.f32.xlu1 %v1677_v5 }
 0x615   : > { %v3673_v6 = vpop.eup %3672 }
 0x616   : > { %v2011_v7 = vsel %vm1421_vm3, %v3673_v6, 0.0  ;;  %v3675_v11 = vpop.eup %3674 }
 0x617   : > { %2012 = vadd.xlane.f32.xlu1 %v2011_v7  ;;  %v1844_v12 = vsel %vm1421_vm3, %v3675_v11, 0.0  ;;  %v3197_v7 = vld [vmem:[%s5833_s12] ss:$0 sm:$0xff]  ;;  %s5841_s12 = sld [smem:[#allocation83_spill]] (!%p3205_p8) }
 0x621   : > { %1515 = vrot.lane.b32.xlu0 %v5262_v27, %s4398_s23  ;;  %s5840_s23 = smov (!%p3205_p8), %s5839_s27 }
 0x628   : > { %1849 = vrot.lane.b32.xlu1 %v5262_v27, %s4399_s9  ;;  %s5842_s9 = sld [smem:[#allocation82_spill]] (!%p3205_p8) }
 0x640   : > { %1845 = vadd.xlane.f32.xlu0 %v1844_v12  ;;  %v2317_v12 = vld [vmem:[%s5221_s17] sm:$0xff] }
 0x656   : > { %2016 = vrot.lane.b32.xlu0 %v5262_v27, %s4400_s28 }
 0x698   : > { %v1512_v14 = vpop.xlane.xlu0 %1511 }
 0x699   : > { %3676 = vrcp.f32 %v1512_v14 }
 0x69c   : > { %v1516_v15 = vpop.permute.xlu0 %1515  ;;  %v1679_v16 = vpop.xlane.xlu1 %1678 }
 0x69d   : > { %3678 = vrcp.f32 %v1679_v16  ;;  %3290 = vmatpush3.msra.mxu1 %v1516_v15  ;;  %v2319_v15 = vld [vmem:[%s5221_s17 + $0x10] sm:$0xff]  ;;  %v2320_v16 = vld [vmem:[%s5221_s17 + $0x18] sm:$0xff] }
 0x69e   : > { %3299 = vmatprep.subr.mxu1 %v4389_v22 }
 0x6a3   : > { %v3677_v17 = vpop.eup %3676 }
 0x6a4   : > { %v1514_v18 = vmul.f32 %v3677_v17, %v3669_v1  ;;  %v2013_v20 = vpop.xlane.xlu1 %2012  ;;  %v2227_v1 = vld [vmem:[%s5216_s19 + $0x18] sm:$0xff]  ;;  %v3409_v17 = vpack.c.bf16 %v2320_v16, %v2319_v15 }
 0x6a6   : > { %3292 = vmatmul.mubr.msk.f32.vlgmr.msra.gmra.mrb[4].mxu1 %vm1421_vm3, %v1514_v18  ;;  %v2321_v18 = vld [vmem:[%s5221_s17 + $0x20] sm:$0xff] }
 0x6a7   : > { %v3679_v21 = vpop.eup %3678  ;;  %3300 = vmatpush3.msra.mxu1 %v1683_v13  ;;  %3301 = vmatprep.mubr.msk.f32.mxu1 %vm4388_vm1, %v4389_v22  ;;  %v2318_v13 = vld [vmem:[%s5221_s17 + $0x8] sm:$0xff] }
 0x6a8   : > { %v1681_v24 = vmul.f32 %v3679_v21, %v3671_v4  ;;  %v1850_v25 = vpop.permute.xlu1 %1849  ;;  %3309 = vmatprep.subr.mxu1 %v4389_v22  ;;  %v3406_v14 = vpack.c.bf16 %v2318_v13, %v2317_v12 }
 0x6aa   : > { %3302 = vmatmul.mubr.msk.f32.vlgmr.msra.gmra.mrb[6].mxu1 %vm1421_vm3, %v1681_v24  ;;  %v2323_v24 = vld [vmem:[%s5221_s17 + $0x30] sm:$0xff] }
 0x6ab   : > { %3310 = vmatpush3.msra.mxu1 %v1850_v25  ;;  %3311 = vmatprep.mubr.msk.f32.mxu1 %vm4388_vm1, %v4389_v22  ;;  %v2324_v25 = vld [vmem:[%s5221_s17 + $0x38] sm:$0xff] }
 0x6ac   : > { %3319 = vmatprep.subr.mxu1 %v4389_v22 }
 0x6cd   : > { %v1846_v26 = vpop.xlane.xlu0 %1845 }
 0x6ce   : > { %3680 = vrcp.f32 %v1846_v26  ;;  %v3415_v26 = vpack.c.bf16 %v2324_v25, %v2323_v24 }
 0x6cf   : > { %3682 = vrcp.f32 %v2013_v20  ;;  %v2322_v20 = vld [vmem:[%s5221_s17 + $0x28] sm:$0xff]  ;;  %s5836_s17 = scalar_lea.vmem [#allocation21], %s5169_s8 }
 0x6d0   : > { %v3412_v21 = vpack.c.bf16 %v2322_v20, %v2321_v18  ;;  %v3201_v39 = vld [vmem:[%s5836_s17] ss:$0 sm:$0xff] }
 0x6d1   : > { %v2017_v30 = vpop.permute.xlu0 %2016 }
 0x6d8   : > { %v3681_v27 = vpop.eup %3680 }
 0x6d9   : > { %v1848_v28 = vmul.f32 %v3681_v27, %v3675_v11  ;;  %v3683_v29 = vpop.eup %3682 }
 0x6da   : > { %v2015_v31 = vmul.f32 %v3683_v29, %v3673_v6 }
 0x6db   : > { %3312 = vmatmul.mubr.msk.f32.vlgmr.msra.gmra.mrb[8].mxu1 %vm1421_vm3, %v1848_v28 }
 0x6dc   : > { %3320 = vmatpush3.msra.mxu1 %v2017_v30  ;;  %3321 = vmatprep.mubr.msk.f32.mxu1 %vm4388_vm1, %v4389_v22 }
 0x6dd   : > { %3399 = vmatprep.subr.bf16.mxu1 %v4387_v19 }
 0x6df   : > { %3322 = vmatmul.mubr.msk.f32.vlgmr.msra.gmra.mrb[10].mxu1 %vm1421_vm3, %v2015_v31 }
 0x6e0   : > { %3343 = vmatprep.mubr.msk.f32.mxu1 %vm4388_vm1, %v4389_v22 }
 0x779   : > { %v1587_v35 = vpop.f32.mrb[4].mxu1 }
 0x77a   : > { %v3293_v36 = vpop.f32.mrb[5].mxu1 }
 0x77d   : > { %v1754_v37 = vpop.f32.mrb[6].mxu1 }
 0x77e   : > { %2093 = vrot.lane.b32.xlu1 %v1754_v37, %s4401_s11  ;;  %v3303_v38 = vpop.f32.mrb[7].mxu1 }
 0x7ae   : > { %v1921_v42 = vpop.f32.mrb[8].mxu1 }
 0x7af   : > { %2097 = vrot.lane.b32.xlu0 %v1921_v42, %s4402_s15  ;;  %v3313_v43 = vpop.f32.mrb[9].mxu1 }
 0x7b2   : > { %v2088_v44 = vpop.f32.mrb[10].mxu1 }
 0x7b3   : > { %2101 = vrot.lane.b32.xlu1 %v2088_v44, %s4403_s16  ;;  %v3323_v45 = vpop.f32.mrb[11].mxu1 }
 0x7f0   : > { %v2094_v46 = vpop.permute.xlu1 %2093 }
 0x7f1   : > { %v2104_v48 = vsel %vm1421_vm3, %v1587_v35, %v2094_v46 }
 0x821   : > { %v2098_v47 = vpop.permute.xlu0 %2097 }
 0x822   : > { %v2106_v49 = vsel %vm2105_vm4, %v2104_v48, %v2098_v47 }
 0x825   : > { %v2102_v50 = vpop.permute.xlu1 %2101 }
 0x826   : > { %v2108_v51 = vsel %vm2107_vm5, %v2106_v49, %v2102_v50 }
 0x827   : > { %3333 = vmatmul.mubr.msk.f32.vlgmr.msra.gmra.mrb[6].mxu0 %vm1331_vm2, %v2108_v51 }
 0x828   : > { %3362 = vmatprep.mubr.msk.f32.mxu0 %vm4388_vm1, %v4389_v22  ;;  %v2224_v22 = vld [vmem:[%s5216_s19] sm:$0xff]  ;;  %3407 = vmatpush3.bf16.msra.mxu0 %v3406_v14 }
 0x829   : > { %v3400_v0 = vpack.c.bf16 %v2225_v63, %v2224_v22  ;;  %3408 = vmatprep.subr.bf16.mxu0 %v4387_v19  ;;  %v2445_v63 = vld [vmem:[%s5840_s23 + $0x18] sm:$0xff] (!%p3205_p8) }
 0x82b   : > { %3401 = vmatpush3.bf16.msra.mxu1 %v3400_v0  ;;  %v4406_v0 = vmov (!%p3205_p8), 0.0  }
 0x82c   : > { %3402 = vmatprep.subr.bf16.mxu1 %v4387_v19  ;;  %3410 = vmatpush3.bf16.msra.mxu0 %v3409_v17 }
 0x82d   : > { %3411 = vmatprep.subr.bf16.mxu0 %v4387_v19 }
 0x830   : > { %3413 = vmatpush3.bf16.msra.mxu0 %v3412_v21 }
 0x831   : > { %3414 = vmatprep.subr.bf16.mxu0 %v4387_v19 }
 0x834   : > { %3416 = vmatpush3.bf16.msra.mxu0 %v3415_v26 }
 0x8fa   : > { %v2189_v53 = vpop.f32.mrb[6].mxu0 }
 0x8fb   : > { %v2190_v54 = vadd.f32 %v3195_v52, %v2189_v53  ;;  %v3334_v55 = vpop.f32.mrb[7].mxu0 }
 0x8fd   : > { %v2193_v56 = vadd.f32 %v2190_v54, %v5245_v23  ;;  %v2226_v23 = vld [vmem:[%s5216_s19 + $0x10] sm:$0xff]  ;;  %s5835_s19 = scalar_lea.vmem [#allocation19], %s5169_s8  ;;  %v3203_v54 = vld [vmem:[%s5837_s6] ss:$0 sm:$0xff] }
 0x8fe   : > { %v3403_v2 = vpack.c.bf16 %v2227_v1, %v2226_v23  ;;  %v3199_v27 = vld [vmem:[%s5835_s19] ss:$0 sm:$0xff] }
 0x8ff   : > { %v2196_v57 = vsel %vm1331_vm2, %v2193_v56, 0.0  ;;  %v2523_v1 = vld [vmem:[%s5841_s12] sm:$0xff] (!%p3205_p8) }
 0x900   : > { %2197 = vadd.xlane.f32.xlu0 %v2196_v57  ;;  %3404 = vmatpush3.bf16.msra.mxu1 %v3403_v2  ;;  %v2524_v2 = vld [vmem:[%s5841_s12 + $0x8] sm:$0xff] (!%p3205_p8) }
 0x98d   : > { %v2198_v58 = vpop.xlane.xlu0 %2197 }
 0x98e   : > { %v2200_v59 = vmul.f32 0.03125, %v2198_v58 }
 0x990   : > { %v2201_v60 = vsub.f32 %v2193_v56, %v2200_v59  ;;  %v3204_v56 = vld [vmem:[%s1122_s5] ss:$0 sm:$0xff]  ;;  %s5843_s5 = sld [smem:[#allocation84_spill]] (!%p3205_p8) }
 0x991   : > { %v2442_v59 = vld [vmem:[%s5839_s27] sm:$0xff] (!%p3205_p8) }
 0x992   : > { %v2202_v61 = vmul.f32 %v2201_v60, %v2201_v60 }
 0x994   : > { %v2203_v62 = vsel %vm1331_vm2, %v2202_v61, 0.0  ;;  %v2444_v61 = vld [vmem:[%s5840_s23 + $0x10] sm:$0xff] (!%p3205_p8) }
 0x995   : > { %2204 = vadd.xlane.f32.xlu1 %v2203_v62  ;;  %v4404_v62 = vmov (!%p3205_p8), 0.0|0.0   ;;  %v3421_v23 = vpack.c.bf16 (!%p3205_p8), %v2445_v63, %v2444_v61 }
 0x996   : > { %3417 = vmatprep.subr.bf16.mxu0 (!%p3205_p8), %v4404_v62  ;;  %3423 = vmatprep.subr.bf16.mxu1 (!%p3205_p8), %v4404_v62  ;;  %v2527_v12 = vld [vmem:[%s5843_s5] sm:$0x1] (!%p3205_p8) }
 0xa22   : > { %v2205_v3 = vpop.xlane.xlu1 %2204 }
 0xa23   : > { %v2206_v4 = vmul.f32 0.03125, %v2205_v3  ;;  %v3424_v3 = vpack.c.bf16 (!%p3205_p8), %v2524_v2, %v2523_v1 }
 0xa25   : > { %v2207_v5 = vadd.f32 1e-12, %v2206_v4  ;;  %v2525_v4 = vld [vmem:[%s5841_s12 + $0x10] sm:$0xff] (!%p3205_p8) }
 0xa27   : > { %3684 = vrsqrt.f32 %v2207_v5  ;;  %v2526_v5 = vld [vmem:[%s5841_s12 + $0x18] sm:$0xff] (!%p3205_p8) }
 0xa31   : > { %v3685_v6 = vpop.eup %3684 }
 0xa32   : > { %v2209_v8 = vmul.f32 %v3685_v6, %v2201_v60  ;;  %v2443_v60 = vld [vmem:[%s5840_s23 + $0x8] sm:$0xff] (!%p3205_p8)  ;;  %v3427_v6 = vpack.c.bf16 (!%p3205_p8), %v2526_v5, %v2525_v4 }
 0xa33   : > { %v3418_v22 = vpack.c.bf16 (!%p3205_p8), %v2443_v60, %v2442_v59 }
 0xa34   : > { %v2216_v10 = vmul.f32 %v3197_v7, %v2209_v8  ;;  %v2446_v7 = vld [vmem:[%s5842_s9] sm:$0x1] (!%p3205_p8) }
 0xa36   : > { %v2223_v11 = vadd.f32 %v3198_v9, %v2216_v10 }
 0xa38   : > { %3344 = vmatmul.mubr.msk.f32.vlgmr.msra.gmra.mrb[12].mxu1 %vm1331_vm2, %v2223_v11 }
 0xa39   : > { %3384 = vmatprep.mubr.msk.f32.mxu1 (!%p3205_p8), %vm4405_vm7, %v4406_v0  ;;  %3425 = vmatpush3.bf16.msra.mxu1 (!%p3205_p8), %v3424_v3 }
 0xa3a   : > { %3426 = vmatprep.subr.bf16.mxu1 (!%p3205_p8), %v4404_v62 }
 0xa3d   : > { %3428 = vmatpush3.bf16.msra.mxu1 (!%p3205_p8), %v3427_v6 }
 0xb0b   : > { %v2304_v28 = vpop.f32.mrb[12].mxu1 }
 0xb0c   : > { %v2305_v29 = vadd.f32 %v3199_v27, %v2304_v28  ;;  %v3345_v30 = vpop.f32.mrb[13].mxu1 }
 0xb0e   : > { %v2308_v31 = vmul.f32 %v2305_v29, %v2305_v29 }
 0xb10   : > { %v2309_v32 = vmul.f32 %v2308_v31, %v2305_v29 }
 0xb12   : > { %v2310_v33 = vmul.f32 0.044715, %v2309_v32 }
 0xb14   : > { %v2311_v34 = vadd.f32 %v2310_v33, %v2305_v29 }
 0xb16   : > { %v2312_v35 = vmul.f32 0.7978846, %v2311_v34 }
 0xb18   : > { %3686 = vtanh.f32 %v2312_v35 }
 0xb22   : > { %v3687_v36 = vpop.eup %3686 }
 0xb23   : > { %v2314_v37 = vadd.f32 1.0, %v3687_v36 }
 0xb25   : > { %v2315_v38 = vmul.f32 0.5, %v2314_v37 }
 0xb27   : > { %v2316_v19 = vmul.f32 %v2315_v38, %v2305_v29 }
 0xb29   : > { %3363 = vmatmul.mubr.msk.f32.vlgmr.msra.gmra.mrb[8].mxu0 %vm2332_vm6, %v2316_v19 }
 0xb2a   : > { %3373 = vmatprep.mubr.msk.f32.mxu0 (!%p3205_p8), %vm4405_vm7, %v4406_v0  ;;  %3419 = vmatpush3.bf16.msra.mxu0 (!%p3205_p8), %v3418_v22 }
 0xb2b   : > { %3420 = vmatprep.subr.bf16.mxu0 (!%p3205_p8), %v4404_v62 }
 0xb2e   : > { %3422 = vmatpush3.bf16.msra.mxu0 (!%p3205_p8), %v3421_v23 }
 0xbfc   : > { %v2402_v40 = vpop.f32.mrb[8].mxu0 }
 0xbfd   : > { %v2403_v41 = vadd.f32 %v3201_v39, %v2402_v40  ;;  %v3364_v42 = vpop.f32.mrb[9].mxu0 }
 0xbff   : > { %v2406_v43 = vadd.f32 %v2403_v41, %v2223_v11 }
 0xc01   : > { %v2409_v44 = vsel %vm1331_vm2, %v2406_v43, 0.0 }
 0xc02   : > { %2410 = vadd.xlane.f32.xlu0 %v2409_v44 }
 0xc8f   : > { %v2411_v45 = vpop.xlane.xlu0 %2410 }
 0xc90   : > { %v2412_v46 = vmul.f32 0.03125, %v2411_v45 }
 0xc92   : > { %v2413_v47 = vsub.f32 %v2406_v43, %v2412_v46 }
 0xc94   : > { %v2414_v48 = vmul.f32 %v2413_v47, %v2413_v47 }
 0xc96   : > { %v2415_v49 = vsel %vm1331_vm2, %v2414_v48, 0.0 }
 0xc97   : > { %2416 = vadd.xlane.f32.xlu0 %v2415_v49 }
 0xd24   : > { %v2417_v50 = vpop.xlane.xlu0 %2416 }
 0xd25   : > { %v2418_v51 = vmul.f32 0.03125, %v2417_v50 }
 0xd27   : > { %v2419_v52 = vadd.f32 1e-12, %v2418_v51 }
 0xd29   : > { %3688 = vrsqrt.f32 %v2419_v52 }
 0xd33   : > { %v3689_v53 = vpop.eup %3688 }
 0xd34   : > { %v2421_v55 = vmul.f32 %v3689_v53, %v2413_v47  ;;  %2440 = sbr.rel (%p3205_p8) target bundleno = 3826 (0xef2), region = 168 }
 0xd36   : > { %v2428_v57 = vmul.f32 %v3203_v54, %v2421_v55 }
 0xd38   : > { %v2435_v58 = vadd.f32 %v3204_v56, %v2428_v57 }
 0xd3a   : > { %2436 = vst.msk [vmem:[#allocation2] sm:$0xff] %vm1331_vm2, %v2435_v58  ;;  %2441 = vst.msk [vmem:[%s1257_s20] sm:$0xff] (!%p3205_p8), %vm1331_vm2, %v2435_v58  ;;  %3374 = vmatmul.mubr.msk.f32.vlgmr.msra.gmra.mrb[0].mxu0 (!%p3205_p8), %vm1331_vm2, %v2435_v58 }
 0xe0d   : > { %v2516_v8 = vpop.f32.mrb[0].mxu0 }
 0xe0e   : > { %v2517_v9 = vadd.f32 %v2516_v8, %v2446_v7  ;;  %v3375_v10 = vpop.f32.mrb[1].mxu0 }
 0xe10   : > { %3690 = vtanh.f32 %v2517_v9 }
 0xe1a   : > { %v3691_v11 = vpop.eup %3690 }
 0xe1b   : > { %2522 = vst.msk [vmem:[%s1263_s14] sm:$0x1] %vm2521_vm8, %v3691_v11  ;;  %3385 = vmatmul.mubr.msk.f32.vlgmr.msra.gmra.mrb[0].mxu1 %vm1331_vm2, %v3691_v11 }
 0xeee   : > { %v2597_v13 = vpop.f32.mrb[0].mxu1 }
 0xeef   : > { %v2598_v14 = vadd.f32 %v2597_v13, %v2527_v12  ;;  %v3386_v15 = vpop.f32.mrb[1].mxu1 }
 0xef1   : > { %2602 = vst.msk [vmem:[%s5707_s22] sm:$0x1] %vm2601_vm9, %v2598_v14 }
 0xef2 PF: > { %s5844_s11 = sld [smem:[#allocation48_spill]]  ;;  %s5845_s15 = sld [smem:[#allocation49_spill]] }
 0xef3   : > { %s5846_s16 = sld [smem:[#allocation54_spill]]  ;;  %s2650_s19 = sshll.u32 %s1250_s13, 4  ;;  %s5413_s19 = int_to_ptr.vmem [resolvable:$true] %s2650_s19 }
 0xef4   : > { %s5847_s21 = sld [smem:[#allocation86_spill]]  ;;  %s5708_s27 = scalar_lea.sflag [#allocation27], %s5156_s25 }
 0xef5   : > { %s4078_s9 = scalar_lea.vmem %s5413_s19, 128  ;;  %s4407_s28 = smov [#allocation26]  }
 0xef6   : > { %p4079_p0 = scmp.ne.s32.totalorder %s5413_s19, %s4078_s9  ;;  %s4082_s8 = sshll.u32 %s4407_s28, 4  ;;  %s4083_s8 = int_to_ptr.vmem [resolvable:$false] %s4082_s8 }
 0xef7   : > { %s4084_s30 = scalar_lea.vmem %s4083_s8, 256  ;;  %p4085_p2 = scmp.lt.s32.totalorder %s5413_s19, %s4083_s8 }
 0xef8   : > { %s3212_s2 = sshll.u32 %s5844_s11, 1  ;;  %p4086_p6 = scmp.lt.s32.totalorder %s4084_s30, %s4078_s9 }
 0xef9   : > { %s2643_s1 = sadd.s32 %s5845_s15, %s3212_s2  ;;  %p5848_p4 = scmp.ne.s32.totalorder %s5846_s16, 0 }
 0xefa   : > { %s3213_s17 = sshll.u32 %s2643_s1, 7  ;;  %p4087_p10 = por %p4086_p6, %p4085_p2 }
 0xefb   : > { %s2648_s24 = scalar_lea.hbm %s5847_s21, %s3213_s17  ;;  %p4080_p12 = pnand %p4079_p0, %p5848_p4 }
 0xefd   : > { %p4081_p7 = pneg %p4080_p12 }
 0xeff   : > { %p4088_p9 = pnand %p4087_p10, %p4081_p7 }
 0xf01   : > { %4091 = shalt.err (!%p4088_p9)
}
 0xf02   : > { %s4092_s13 = scalar_lea.hbm %s2648_s24, 128  ;;  %s4096_s2 = scalar_lea.hbm %s5847_s21, 512 }
 0xf03   : > { %p4093_p13 = scmp.ne.s32.totalorder %s2648_s24, %s4092_s13  ;;  %p4097_p5 = scmp.lt.u32.totalorder %s2648_s24, %s5847_s21 }
 0xf04   : > { %p4098_p11 = scmp.lt.u32.totalorder %s4096_s2, %s4092_s13  ;;  %p4100_p0 = scmp.lt.u32.totalorder %s4092_s13, %s2648_s24 }
 0xf05   : > { %p4094_p1 = pnand %p4093_p13, %p5848_p4 }
 0xf06   : > { %p4099_p8 = por %p4098_p11, %p4097_p5 }
 0xf07   : > { %p4095_p3 = pneg %p4094_p1 }
 0xf08   : > { %p4101_p12 = por %p4100_p0, %p4099_p8 }
 0xf0a   : > { %p4102_p7 = pnand %p4101_p12, %p4095_p3 }
 0xf0c   : > { %4105 = shalt.err (!%p4102_p7)
}
 0xf0d   : > { %s5849_s6 = sld [smem:[#allocation58_spill]]  ;;  %s3215_s7 = sshll.u32 %s5845_s15, 4 }
 0xf0e   : > { %3460 = dma.vmem_to_hbm [thread:$0]  (%p5848_p4), %s5413_s19, 128, %s2648_s24, %s5708_s27  }
 0xf0f   : > { %s2676_s9 = sshll.u32 %s1263_s14, 4  ;;  %s5850_s30 = sld [smem:[#allocation88_spill]]  ;;  %s2677_s9 = int_to_ptr.vmem [resolvable:$true] %s2676_s9 }
 0xf10   : > { %s5709_s16 = scalar_lea.sflag [#allocation30], %s5156_s25  ;;  %s4106_s11 = scalar_lea.vmem %s2677_s9, 16 }
 0xf11   : > { %p4107_p2 = scmp.ne.s32.totalorder %s2677_s9, %s4106_s11  ;;  %s4408_s2 = smov [#allocation29]  }
 0xf12   : > { %s4110_s1 = sshll.u32 %s4408_s2, 4  ;;  %s4111_s1 = int_to_ptr.vmem [resolvable:$false] %s4110_s1 }
 0xf13   : > { %p5852_p6 = scmp.ne.s32.totalorder %s5849_s6, 0  ;;  %s4112_s19 = scalar_lea.vmem %s4111_s1, 32 }
 0xf14   : > { %p4113_p4 = scmp.lt.s32.totalorder %s2677_s9, %s4111_s1  ;;  %p4114_p13 = scmp.lt.s32.totalorder %s4112_s19, %s4106_s11 }
 0xf15   : > { %s5851_s13 = smov %s5850_s30  ;;  %s5445_s5 = scalar_lea.hbm %s5850_s30, %s3215_s7 }
 0xf16   : > { %p4108_p10 = pnand %p4107_p2, %p5852_p6  ;;  %p4115_p1 = por %p4114_p13, %p4113_p4 }
 0xf18   : > { %p4109_p9 = pneg %p4108_p10 }
 0xf1a   : > { %p4116_p3 = pnand %p4115_p1, %p4109_p9 }
 0xf1c   : > { %4119 = shalt.err (!%p4116_p3)
}
 0xf1d   : > { %s4120_s14 = scalar_lea.hbm %s5445_s5, 16  ;;  %s4124_s28 = scalar_lea.hbm %s5851_s13, 32 }
 0xf1e   : > { %p4121_p5 = scmp.ne.s32.totalorder %s5445_s5, %s4120_s14  ;;  %p4125_p0 = scmp.lt.u32.totalorder %s5445_s5, %s5851_s13 }
 0xf1f   : > { %p4126_p12 = scmp.lt.u32.totalorder %s4124_s28, %s4120_s14  ;;  %p4128_p2 = scmp.lt.u32.totalorder %s4120_s14, %s5445_s5 }
 0xf20   : > { %p4122_p11 = pnand %p4121_p5, %p5852_p6 }
 0xf21   : > { %p4127_p7 = por %p4126_p12, %p4125_p0 }
 0xf22   : > { %p4123_p8 = pneg %p4122_p11 }
 0xf23   : > { %p4129_p10 = por %p4128_p2, %p4127_p7 }
 0xf25   : > { %p4130_p9 = pnand %p4129_p10, %p4123_p8 }
 0xf27   : > { %4133 = shalt.err (!%p4130_p9)
}
 0xf28   : > { %3462 = dma.vmem_to_hbm [thread:$0]  (%p5852_p6), %s2677_s9, 16, %s5445_s5, %s5709_s16  }
 0xf29   : > { %s3211_s11 = sshll.u32 %s5845_s15, 7  ;;  %s5853_s19 = sld [smem:[#allocation85_spill]] }
 0xf2a   : > { %s2635_s14 = sshll.u32 %s1243_s18, 4  ;;  %s5854_s8 = sld [smem:[#allocation87_spill]]  ;;  %s5475_s14 = int_to_ptr.vmem [resolvable:$true] %s2635_s14 }
 0xf2b   : > { %s2604_s27 = scalar_lea.sflag [#allocation6], %s5144_s4  ;;  %s4134_s9 = scalar_lea.vmem %s5475_s14, 128 }
 0xf2c   : > { %p4135_p4 = scmp.ne.s32.totalorder %s5475_s14, %s4134_s9  ;;  %s4409_s5 = smov [#allocation25]  }
 0xf2d   : > { %s4138_s2 = sshll.u32 %s4409_s5, 4  ;;  %s4139_s2 = int_to_ptr.vmem [resolvable:$false] %s4138_s2 }
 0xf2e   : > { %p4136_p13 = pnand %p4135_p4, %p5852_p6  ;;  %s4140_s18 = scalar_lea.vmem %s4139_s2, 256 }
 0xf2f   : > { %s5471_s24 = scalar_lea.hbm %s5853_s19, %s3211_s11  ;;  %p4141_p3 = scmp.lt.s32.totalorder %s5475_s14, %s4139_s2 }
 0xf30   : > { %s5855_s22 = smov %s5854_s8  ;;  %s5480_s30 = scalar_lea.hbm %s5854_s8, %s3211_s11 }
 0xf31   : > { %p4137_p1 = pneg %p4136_p13  ;;  %p4142_p5 = scmp.lt.s32.totalorder %s4140_s18, %s4134_s9 }
 0xf33   : > { %p4143_p11 = por %p4142_p5, %p4141_p3 }
 0xf35   : > { %p4144_p8 = pnand %p4143_p11, %p4137_p1 }
 0xf37   : > { %4147 = shalt.err (!%p4144_p8)
}
 0xf38   : > { %s4148_s11 = scalar_lea.hbm %s5471_s24, 128  ;;  %s4152_s28 = scalar_lea.hbm %s5853_s19, 256 }
 0xf39   : > { %p4149_p0 = scmp.ne.s32.totalorder %s5471_s24, %s4148_s11  ;;  %p4153_p2 = scmp.lt.u32.totalorder %s5471_s24, %s5853_s19 }
 0xf3a   : > { %p4154_p10 = scmp.lt.u32.totalorder %s4152_s28, %s4148_s11  ;;  %p4156_p4 = scmp.lt.u32.totalorder %s4148_s11, %s5471_s24 }
 0xf3b   : > { %p4150_p12 = pnand %p4149_p0, %p5852_p6 }
 0xf3c   : > { %p4155_p9 = por %p4154_p10, %p4153_p2 }
 0xf3d   : > { %p4151_p7 = pneg %p4150_p12 }
 0xf3e   : > { %p4157_p13 = por %p4156_p4, %p4155_p9 }
 0xf40   : > { %p4158_p1 = pnand %p4157_p13, %p4151_p7 }
 0xf42   : > { %4161 = shalt.err (!%p4158_p1)
}
 0xf43   : > { %3459 = dma.vmem_to_hbm [thread:$0]  (%p5852_p6), %s5475_s14, 128, %s5471_s24, %s2604_s27  }
 0xf44   : > { %s2663_s9 = sshll.u32 %s1257_s20, 4  ;;  %s5856_s1 = sld [smem:[#allocation89_spill]]  ;;  %s2664_s9 = int_to_ptr.vmem [resolvable:$true] %s2663_s9 }
 0xf45   : > { %s5857_s11 = scalar_lea.vmem [#allocation31], %s5144_s4  ;;  %s4162_s8 = scalar_lea.vmem %s2664_s9, 128 }
 0xf46   : > { %s2689_s28 = sshll.u32 %s5857_s11, 4  ;;  %p4163_p3 = scmp.ne.s32.totalorder %s2664_s9, %s4162_s8  ;;  %s2690_s28 = int_to_ptr.vmem [resolvable:$true] %s2689_s28 }
 0xf47   : > { %s4410_s5 = smov [#allocation28]  }
 0xf48   : > { %p4164_p5 = pnand %p4163_p3, %p5852_p6  ;;  %s4166_s16 = sshll.u32 %s4410_s5, 4  ;;  %s4167_s16 = int_to_ptr.vmem [resolvable:$false] %s4166_s16 }
 0xf49   : > { %s4168_s27 = scalar_lea.vmem %s4167_s16, 256  ;;  %p4169_p8 = scmp.lt.s32.totalorder %s2664_s9, %s4167_s16 }
 0xf4a   : > { %s5511_s17 = scalar_lea.hbm %s5856_s1, %s3215_s7  ;;  %p4165_p11 = pneg %p4164_p5 }
 0xf4b   : > { %p4170_p0 = scmp.lt.s32.totalorder %s4168_s27, %s4162_s8 }
 0xf4d   : > { %p4171_p12 = por %p4170_p0, %p4169_p8 }
 0xf4f   : > { %p4172_p7 = pnand %p4171_p12, %p4165_p11 }
 0xf51   : > { %4175 = shalt.err (!%p4172_p7)
}
 0xf52   : > { %s4176_s4 = scalar_lea.hbm %s5480_s30, 128  ;;  %s4180_s15 = scalar_lea.hbm %s5855_s22, 256 }
 0xf53   : > { %p4177_p2 = scmp.ne.s32.totalorder %s5480_s30, %s4176_s4  ;;  %p4181_p4 = scmp.lt.u32.totalorder %s5480_s30, %s5855_s22 }
 0xf54   : > { %p4182_p13 = scmp.lt.u32.totalorder %s4180_s15, %s4176_s4  ;;  %p4184_p3 = scmp.lt.u32.totalorder %s4176_s4, %s5480_s30 }
 0xf55   : > { %p4178_p10 = pnand %p4177_p2, %p5852_p6 }
 0xf56   : > { %p4183_p1 = por %p4182_p13, %p4181_p4 }
 0xf57   : > { %p4179_p9 = pneg %p4178_p10 }
 0xf58   : > { %p4185_p5 = por %p4184_p3, %p4183_p1 }
 0xf5a   : > { %p4186_p11 = pnand %p4185_p5, %p4179_p9 }
 0xf5c   : > { %4189 = shalt.err (!%p4186_p11)
}
 0xf5d   : > { %s5858_s24 = scalar_lea.sflag [#allocation27], %s5156_s25  ;;  %s4190_s14 = scalar_lea.vmem %s2690_s28, 16 }
 0xf5e   : > { %3461 = dma.vmem_to_hbm [thread:$0]  (%p5852_p6), %s2664_s9, 128, %s5480_s30, %s5858_s24  }
 0xf5f   : > { %p4191_p8 = scmp.ne.s32.totalorder %s2690_s28, %s4190_s14  ;;  %s4411_s2 = smov [#allocation31]  }
 0xf60   : > { %s4194_s18 = sshll.u32 %s4411_s2, 4  ;;  %s4195_s18 = int_to_ptr.vmem [resolvable:$false] %s4194_s18 }
 0xf61   : > { %p4192_p0 = pnand %p4191_p8, %p5852_p6  ;;  %s4196_s11 = scalar_lea.vmem %s4195_s18, 32 }
 0xf62   : > { %p4197_p7 = scmp.lt.s32.totalorder %s2690_s28, %s4195_s18  ;;  %p4198_p2 = scmp.lt.s32.totalorder %s4196_s11, %s4190_s14 }
 0xf63   : > { %p4193_p12 = pneg %p4192_p0 }
 0xf64   : > { %p4199_p10 = por %p4198_p2, %p4197_p7 }
 0xf66   : > { %p4200_p9 = pnand %p4199_p10, %p4193_p12 }
 0xf68   : > { %4203 = shalt.err (!%p4200_p9)
}
 0xf69   : > { %s4204_s30 = scalar_lea.hbm %s5511_s17, 16  ;;  %s4208_s5 = scalar_lea.hbm %s5856_s1, 32 }
 0xf6a   : > { %p4205_p4 = scmp.ne.s32.totalorder %s5511_s17, %s4204_s30  ;;  %p4209_p3 = scmp.lt.u32.totalorder %s5511_s17, %s5856_s1 }
 0xf6b   : > { %p4210_p5 = scmp.lt.u32.totalorder %s4208_s5, %s4204_s30  ;;  %p4212_p8 = scmp.lt.u32.totalorder %s4204_s30, %s5511_s17 }
 0xf6c   : > { %p4206_p13 = pnand %p4205_p4, %p5852_p6 }
 0xf6d   : > { %p4211_p11 = por %p4210_p5, %p4209_p3 }
 0xf6e   : > { %p4207_p1 = pneg %p4206_p13 }
 0xf6f   : > { %p4213_p0 = por %p4212_p8, %p4211_p11 }
 0xf71   : > { %p4214_p12 = pnand %p4213_p0, %p4207_p1 }
 0xf73   : > { %4217 = shalt.err (!%p4214_p12)
}
 0xf74   : > { %s5859_s29 = scalar_lea.sflag [#allocation30], %s5156_s25 }
 0xf75   : > { %3463 = dma.vmem_to_hbm [thread:$0]  (%p5852_p6), %s2690_s28, 16, %s5511_s17, %s5859_s29  }
 0xf76 PF: > { %s5860_s20 = sld [smem:[#allocation51_spill]]  ;;  %s5861_s15 = sld [smem:[#allocation46_spill]] }
 0xf77   : > { %s5862_s7 = sld [smem:[#allocation61_spill]] }
 0xf7c   : > { %p3531_p7 = scmp.ge.s32.totalorder %s5860_s20, 2  ;;  %s2701_s16 = sand.u32 1, %s5861_s15  }
 0xf7d   : > { %p5863_p2 = scmp.ne.s32.totalorder %s5862_s7, 0  ;;  %s2702_s24 = scalar_lea.sflag [#allocation6], %s2701_s16 }
 0xf7f   : > { %p3511_p10 = pnand %p3531_p7, %p5863_p2 }
 0xf81   : > { %4303 = dma.done.wait (!%p3511_p10), %s2702_s24, 128  }
 0xf82   : > { %4305 = vsyncadd (!%p3511_p10), %s2702_s24, 4294967168  ;;  %s5864_s14 = sadd.s32 4294967294, %s5860_s20   ;;  %s5865_s2 = sld [smem:[#allocation62_spill]] }
 0xf83   : > { %s2710_s18 = sand.u32 1, %s5864_s14  }
 0xf84   : > { %s2711_s25 = scalar_lea.sflag [#allocation27], %s2710_s18 }
 0xf88   : > { %p5866_p9 = scmp.ne.s32.totalorder %s5865_s2, 0 }
 0xf8a   : > { %p3514_p4 = pnand %p3531_p7, %p5866_p9 }
 0xf8c   : > { %4307 = dma.done.wait (!%p3514_p4), %s2711_s25, 128  }
 0xf8d   : > { %4309 = vsyncadd (!%p3514_p4), %s2711_s25, 4294967168 }
 0xf8e   : > { %4311 = dma.done.wait (!%p3511_p10), %s2711_s25, 128  }
 0xf8f   : > { %4313 = vsyncadd (!%p3511_p10), %s2711_s25, 4294967168  ;;  %s2729_s6 = scalar_lea.sflag [#allocation30], %s2710_s18 }
 0xf90   : > { %4315 = dma.done.wait (!%p3511_p10), %s2729_s6, 32  }
 0xf91   : > { %4317 = vsyncadd (!%p3511_p10), %s2729_s6, 4294967264  ;;  %s66_s6 = sadd.s32 1, %s5860_s20   ;;  %s5868_s28 = sld [smem:[#allocation43_spill]] }
 0xf92   : > { %p5562_p6 = scmp.ge.s32.totalorder %s66_s6, 6   ;;  %s5869_s7 = sld [smem:[#allocation63_spill]] }
 0xf93   : > { %s5870_s11 = sld [smem:[#allocation44_spill]]  ;;  %s5871_s8 = sld [smem:[#allocation45_spill]] }
 0xf94   : > { %s5872_s4 = sld [smem:[#allocation59_spill]]  ;;  %s5873_s30 = sld [smem:[#allocation47_spill]] }
 0xf95   : > { %s5874_s9 = sld [smem:[#allocation60_spill]]  ;;  %s5875_s5 = sld [smem:[#allocation50_spill]] }
 0xf96   : > { %s5876_s15 = sld [smem:[#allocation55_spill]]  ;;  %s5877_s16 = sld [smem:[#allocation57_spill]] }
 0xf97   : > { %s5878_s27 = smov %s4324_s3  ;;  %s5879_s3 = smov %s5868_s28 }
 0xf98   : > { %s5881_s29 = smov %s4348_s0  ;;  %s5884_s2 = smov %s4368_s10 }
 0xf99   : > { %s5880_s28 = smov %s5870_s11  ;;  %65 = sbr.rel (!%p5562_p6) target bundleno = 52 (0x34), region = 365 }
 0xf9a   : > { %s5882_s0 = smov %s5873_s30 }
 0xf9b   : > { %s5883_s30 = smov %s5875_s5 }
 0xf9c   : > { %s5885_s5 = smov %s5876_s15  ;;  %s5886_s10 = smov %s5877_s16 }
 0xfa0   :  { %2741 = vsyncpa [#allocation5], 1 }
 0xfa1   :  { %2743 = vsyncpa [#allocation5 + $0x1], 1 }
 0xfa2   :  { %2744 = vsyncpa [#allocation8], 1 }
 0xfa3   :  { %2746 = vsyncpa [#allocation8 + $0x1], 1 }
 0xfa4   :  { %2747 = vsyncpa [#allocation11], 1 }
 0xfa5   :  { %2748 = vsyncpa [#allocation14], 1 }
 0xfa6   :  { %2750 = vsyncpa [#allocation14 + $0x1], 1 }
 0xfa7   :  { %2751 = vsyncpa [#allocation17], 1 }
 0xfa8   :  { %2753 = vsyncpa [#allocation17 + $0x1], 1 }
 0xfa9   :  { %2754 = vsyncpa [#allocation20], 1 }
 0xfaa   :  { %2756 = vsyncpa [#allocation20 + $0x1], 1 }
 0xfab   :  { %2757 = vsyncpa [#allocation23], 1 }
 0xfac   :  { %2759 = vsyncpa [#allocation23 + $0x1], 1 }
 0xfad   :  { %2760 = vsyncpa [#allocation6], 1 }
 0xfae   :  { %2762 = vsyncpa [#allocation6 + $0x1], 1 }
 0xfaf   :  { %2763 = vsyncpa [#allocation27], 1 }
 0xfb0   :  { %2765 = vsyncpa [#allocation27 + $0x1], 1 }
 0xfb1   :  { %2766 = vsyncpa [#allocation30], 1 }
 0xfb2   :  { %2768 = vsyncpa [#allocation30 + $0x1], 1 }

</bundles_post_ra>
